<compile_context>
chip_gen: v5e
topology: v5e:2x2
jax: 0.10.0
libtpu: 0.0.40
codegen_flags: <defaults>
</compile_context>

<pallas_src>
import jax
import jax.numpy as jnp
import numpy as np
from jax.experimental import pallas as pl
from jax.experimental.pallas import tpu as pltpu

OBS_DIM = 4          # CartPole-v0 observation dim
ACTION_DIM = 2       # CartPole-v0 action dim
N_ATOM = 51
H1, H2, H3 = 512, 256, 256

K_PAD = 8                        # first-layer contraction dim padded 4 -> 8
ATOM_PAD = 128                   # each action's 51 atoms padded to a full 128-lane tile
QOUT = ACTION_DIM * ATOM_PAD     # 256 (lane-dense, MXU-friendly final N)
B_TOTAL = H1 + H2 + H3 + QOUT    # 1280 packed bias lanes (all 128-aligned offsets)

MAX_TB = 2048                    # per-tile row cap: VMEM-safe on v7x (64 MiB/TC)


def _fc_kernel(x_ref, w1_ref, w2_ref, w3_ref, wq_ref, b_ref, out_ref):
    # One batch tile per grid step; weights/biases resident in VMEM (replicated blocks).
    x = x_ref[...].astype(jnp.bfloat16)                                   # (TB, 8)

    b1 = b_ref[:, 0:H1]                                                   # (1, 512)
    b2 = b_ref[:, H1:H1 + H2]                                             # (1, 256)
    b3 = b_ref[:, H1 + H2:H1 + H2 + H3]                                   # (1, 256)
    bq = b_ref[:, H1 + H2 + H3:B_TOTAL]                                   # (1, 256), pads = -1e30

    h = jnp.dot(x, w1_ref[...], preferred_element_type=jnp.float32) + b1
    h = jnp.maximum(h, 0.0)                                               # (TB, 512)

    h = jnp.dot(h.astype(jnp.bfloat16), w2_ref[...],
                preferred_element_type=jnp.float32) + b2
    h = jnp.maximum(h, 0.0)                                               # (TB, 256)

    h = jnp.dot(h.astype(jnp.bfloat16), w3_ref[...],
                preferred_element_type=jnp.float32) + b3
    h = jnp.maximum(h, 0.0)                                               # (TB, 256)

    logits = jnp.dot(h.astype(jnp.bfloat16), wq_ref[...],
                     preferred_element_type=jnp.float32) + bq             # (TB, 256)

    # Per-action softmax over its own 128-lane block. Pad lanes carry a -1e30 bias,
    # so exp(pad - max) underflows to 0 and the sum covers exactly the 51 real atoms.
    for a in range(ACTION_DIM):
        lo = a * ATOM_PAD
        l = logits[:, lo:lo + ATOM_PAD]                                   # 128-aligned slice
        m = jnp.max(l, axis=-1, keepdims=True)
        e = jnp.exp(l - m)
        s = jnp.sum(e, axis=-1, keepdims=True)
        inv = pl.reciprocal(s, approx=False)   # EUP slot; keeps sum-to-1 within 1e-5
        out_ref[:, lo:lo + ATOM_PAD] = (e * inv).astype(out_ref.dtype)    # unmasked 128-lane store


def _round_up(n, m):
    return ((n + m - 1) // m) * m


def _cdiv(a, b):
    return -(-a // b)


def _choose_tiling(mb_size):
    """Pick (tb, b_pad).

    Small batches -> one tile (latency-bound path).  mb >= 256 -> at least two tiles
    so ("parallel",) grid semantics can split work across v7x's two TensorCores, with
    tile size capped at MAX_TB rows (VMEM-safe on all generations) and the tile count
    chosen to minimize batch-padding waste (prefer an even number of tiles, then fewer
    grid steps for the single-TC v5e/v6e serial loop).
    """
    if mb_size < 256:
        tb = _round_up(mb_size, 8)
        return tb, tb
    n_lo = max(2, _cdiv(mb_size, MAX_TB))
    best = None
    for n in range(n_lo, n_lo + 8):
        tb = _round_up(_cdiv(mb_size, n), 8)
        b_pad = tb * n
        key = (b_pad - mb_size, n % 2, n)     # waste, prefer even #tiles, fewer steps
        if best is None or key < best[0]:
            best = (key, tb, b_pad)
    return best[1], best[2]


def _build_fc_call(tb, b_pad, single_buffer_weights):
    def w_spec(shape):
        if single_buffer_weights:
            # Replicated operand: never changes across grid steps -> one VMEM buffer.
            return pl.BlockSpec(shape, lambda i: (0, 0), pipeline_mode=pl.Buffered(1))
        return pl.BlockSpec(shape, lambda i: (0, 0))

    flops = 2 * b_pad * (K_PAD * H1 + H1 * H2 + H2 * H3 + H3 * QOUT)
    w_bytes = (K_PAD * H1 + H1 * H2 + H2 * H3 + H3 * QOUT) * 2            # bf16 weights
    bytes_accessed = (w_bytes + B_TOTAL * 4
                      + b_pad * (K_PAD + QOUT) * 4)                       # x in, probs out

    return pl.pallas_call(
        _fc_kernel,
        out_shape=jax.ShapeDtypeStruct((b_pad, QOUT), jnp.float32),
        grid_spec=pltpu.PrefetchScalarGridSpec(
            num_scalar_prefetch=0,
            grid=(b_pad // tb,),
            in_specs=[
                pl.BlockSpec((tb, K_PAD), lambda i: (i, 0)),              # x tile (pipelined)
                w_spec((K_PAD, H1)),                                      # w1 (replicated)
                w_spec((H1, H2)),                                         # w2
                w_spec((H2, H3)),                                         # w3
                w_spec((H3, QOUT)),                                       # wq (atom-padded)
                w_spec((1, B_TOTAL)),                                     # packed biases
            ],
            out_specs=pl.BlockSpec((tb, QOUT), lambda i: (i, 0)),
        ),
        compiler_params=pltpu.CompilerParams(
            dimension_semantics=("parallel",),
            vmem_limit_bytes=32 * 1024 * 1024,
        ),
        cost_estimate=pl.CostEstimate(
            flops=flops,
            transcendentals=b_pad * (QOUT + ACTION_DIM),                  # exps + reciprocals
            bytes_accessed=bytes_accessed,
        ),
    )


def fc_forward(x, params):
    """Forward pass. x: (..., obs_dim) -> (B, action_dim, N_ATOM) probabilities."""
    x = x.reshape(-1, OBS_DIM).astype(jnp.float32)
    mb_size = x.shape[0]
    w1, w2, w3, wq, b_packed = params

    tb, b_pad = _choose_tiling(mb_size)
    # Single fused pad: batch rows -> b_pad, contraction dim 4 -> 8.
    x = jnp.pad(x, ((0, b_pad - mb_size), (0, K_PAD - OBS_DIM)))

    args = (x, w1, w2, w3, wq, b_packed)
    try:
        out = _build_fc_call(tb, b_pad, single_buffer_weights=True)(*args)
    except Exception:
        # Fallback if this JAX version rejects pipeline_mode=pl.Buffered(1) on TPU.
        out = _build_fc_call(tb, b_pad, single_buffer_weights=False)(*args)

    # Flat (b_pad, 256) slab -> (B, action_dim, N_ATOM) via reshape + a single slice.
    out3 = out.reshape(b_pad, ACTION_DIM, ATOM_PAD)
    return jax.lax.slice(out3, (0, 0, 0), (mb_size, ACTION_DIM, N_ATOM))


def pack_params(raw):
    """Pack PyTorch-layout params into the kernel layout.

    raw: [(w1 (4,512), b1 (512,)), (w2 (512,256), b2), (w3 (256,256), b3),
          (wq (256,102), bq (102,))]  with weights already transposed to (in, out).
    """
    (w1, b1), (w2, b2), (w3, b3), (wq, bq) = raw
    # Pad first-layer K 4 -> 8 with zero rows (numerically identical).
    w1p = jnp.zeros((K_PAD, H1), jnp.float32).at[:OBS_DIM].set(w1)
    # Pad each action's 51 atom columns to 128 lanes (zero columns).
    wq3 = wq.reshape(H3, ACTION_DIM, N_ATOM)
    wqp = jnp.zeros((H3, ACTION_DIM, ATOM_PAD), jnp.float32).at[:, :, :N_ATOM].set(wq3)
    wqp = wqp.reshape(H3, QOUT)
    # Pad bias lanes get -1e30 so softmax ignores them; real lanes keep bq.
    bq3 = jnp.full((ACTION_DIM, ATOM_PAD), -1e30, jnp.float32)
    bq3 = bq3.at[:, :N_ATOM].set(bq.reshape(ACTION_DIM, N_ATOM))
    b_packed = jnp.concatenate([b1, b2, b3, bq3.reshape(-1)]).reshape(1, B_TOTAL)
    return (w1p.astype(jnp.bfloat16), w2.astype(jnp.bfloat16),
            w3.astype(jnp.bfloat16), wqp.astype(jnp.bfloat16),
            b_packed.astype(jnp.float32))


def init_params(key):
    """Deterministic init mimicking nn.Linear's U(-1/sqrt(fan_in), 1/sqrt(fan_in))."""
    dims = [(OBS_DIM, H1), (H1, H2), (H2, H3), (H3, ACTION_DIM * N_ATOM)]
    keys = jax.random.split(key, 2 * len(dims))
    raw = []
    for i, (fan_in, fan_out) in enumerate(dims):
        bound = 1.0 / (fan_in ** 0.5)
        w = jax.random.uniform(keys[2 * i], (fan_in, fan_out),
                               minval=-bound, maxval=bound, dtype=jnp.float32)
        b = jax.random.uniform(keys[2 * i + 1], (fan_out,),
                               minval=-bound, maxval=bound, dtype=jnp.float32)
        raw.append((w, b))
    return pack_params(raw)


def fc_reference(x, params):
    """Pure-JAX reference mirroring the kernel's bf16-weight math (for validation)."""
    w1, w2, w3, wq, b = params
    x = x.reshape(-1, OBS_DIM).astype(jnp.float32)
    xp = jnp.pad(x, ((0, 0), (0, K_PAD - OBS_DIM))).astype(jnp.bfloat16)
    b1 = b[:, :H1]
    b2 = b[:, H1:H1 + H2]
    b3 = b[:, H1 + H2:H1 + H2 + H3]
    bq = b[:, H1 + H2 + H3:]
    h = jnp.maximum(jnp.dot(xp, w1, preferred_element_type=jnp.float32) + b1, 0.0)
    h = jnp.maximum(jnp.dot(h.astype(jnp.bfloat16), w2,
                            preferred_element_type=jnp.float32) + b2, 0.0)
    h = jnp.maximum(jnp.dot(h.astype(jnp.bfloat16), w3,
                            preferred_element_type=jnp.float32) + b3, 0.0)
    logits = jnp.dot(h.astype(jnp.bfloat16), wq,
                     preferred_element_type=jnp.float32) + bq
    logits = logits.reshape(-1, ACTION_DIM, ATOM_PAD)[:, :, :N_ATOM]
    return jax.nn.softmax(logits, axis=-1)


if __name__ == "__main__":
    key = jax.random.PRNGKey(0)
    pkey, xkey, xkey2 = jax.random.split(key, 3)
    params = init_params(pkey)

    # Small latency-path test (batch=2, single tile).
    batch = 2
    x = jax.random.normal(xkey, (batch, OBS_DIM), dtype=jnp.float32)
    out = jax.block_until_ready(fc_forward(x, params))
    assert out.shape == (batch, ACTION_DIM, N_ATOM)
    assert jnp.allclose(jnp.sum(out, axis=-1), 1.0, atol=1e-5)
    ref = jax.block_until_ready(fc_reference(x, params))
    np.testing.assert_allclose(np.asarray(out), np.asarray(ref), atol=1e-4, rtol=1e-4)

    # Multi-tile path test (awkward batch size -> 2 tiles, minimal padding waste).
    batch2 = 300
    x2 = jax.random.normal(xkey2, (batch2, OBS_DIM), dtype=jnp.float32)
    out2 = jax.block_until_ready(fc_forward(x2, params))
    assert out2.shape == (batch2, ACTION_DIM, N_ATOM)
    assert jnp.allclose(jnp.sum(out2, axis=-1), 1.0, atol=1e-5)
    ref2 = jax.block_until_ready(fc_reference(x2, params))
    np.testing.assert_allclose(np.asarray(out2), np.asarray(ref2), atol=1e-4, rtol=1e-4)

    print("KERNEL_OK")
</pallas_src>

<mosaic_0001>
module attributes {stable_mosaic.version = 11 : i64} {
  func.func @_fc_kernel(%arg0: i32, %arg1: memref<8x8xf32, #tpu.memory_space<vmem>>, %arg2: memref<8x512xbf16, #tpu.memory_space<vmem>>, %arg3: memref<512x256xbf16, #tpu.memory_space<vmem>>, %arg4: memref<256x256xbf16, #tpu.memory_space<vmem>>, %arg5: memref<256x256xbf16, #tpu.memory_space<vmem>>, %arg6: memref<1x1280xf32, #tpu.memory_space<vmem>>, %arg7: memref<8x256xf32, #tpu.memory_space<vmem>>) attributes {dimension_semantics = [#tpu.dimension_semantics<parallel>], iteration_bounds = array<i64: 1>, scalar_prefetch = 0 : i64, scratch_operands = 0 : i64, tpu.core_type = #tpu.core_type<tc>, window_params = [{transform_indices = @transform_0, window_bounds = array<i64: 8, 8>}, {pipeline_mode = #tpu.pipeline_mode<synchronous>, transform_indices = @transform_1, window_bounds = array<i64: 8, 512>}, {pipeline_mode = #tpu.pipeline_mode<synchronous>, transform_indices = @transform_2, window_bounds = array<i64: 512, 256>}, {pipeline_mode = #tpu.pipeline_mode<synchronous>, transform_indices = @transform_3, window_bounds = array<i64: 256, 256>}, {pipeline_mode = #tpu.pipeline_mode<synchronous>, transform_indices = @transform_4, window_bounds = array<i64: 256, 256>}, {pipeline_mode = #tpu.pipeline_mode<synchronous>, transform_indices = @transform_5, window_bounds = array<i64: 1, 1280>}, {transform_indices = @transform_6, window_bounds = array<i64: 8, 256>}]} {
    %c0 = arith.constant 0 : index
    %c0_0 = arith.constant 0 : index
    %0 = vector.load %arg1[%c0, %c0_0] : memref<8x8xf32, #tpu.memory_space<vmem>>, vector<8x8xf32>
    %1 = arith.truncf %0 : vector<8x8xf32> to vector<8x8xbf16>
    %c0_1 = arith.constant 0 : index
    %c0_2 = arith.constant 0 : index
    %2 = vector.load %arg6[%c0_1, %c0_2] : memref<1x1280xf32, #tpu.memory_space<vmem>>, vector<1x512xf32>
    %c0_3 = arith.constant 0 : index
    %c512 = arith.constant 512 : index
    %3 = vector.load %arg6[%c0_3, %c512] : memref<1x1280xf32, #tpu.memory_space<vmem>>, vector<1x256xf32>
    %c0_4 = arith.constant 0 : index
    %c768 = arith.constant 768 : index
    %4 = vector.load %arg6[%c0_4, %c768] : memref<1x1280xf32, #tpu.memory_space<vmem>>, vector<1x256xf32>
    %c0_5 = arith.constant 0 : index
    %c1024 = arith.constant 1024 : index
    %5 = vector.load %arg6[%c0_5, %c1024] : memref<1x1280xf32, #tpu.memory_space<vmem>>, vector<1x256xf32>
    %c0_6 = arith.constant 0 : index
    %c0_7 = arith.constant 0 : index
    %6 = vector.load %arg2[%c0_6, %c0_7] : memref<8x512xbf16, #tpu.memory_space<vmem>>, vector<8x512xbf16>
    %cst = arith.constant dense<0.000000e+00> : vector<8x512xf32>
    %7 = tpu.matmul %1, %6, %cst {dimension_numbers = #tpu.dot_dimension_numbers<[1], [0], [0], [1], [0, 0, 1, 1], [], []>} : vector<8x8xbf16>, vector<8x512xbf16>, vector<8x512xf32> -> vector<8x512xf32>
    %8 = vector.broadcast %2 : vector<1x512xf32> to vector<8x512xf32>
    %9 = arith.addf %7, %8 : vector<8x512xf32>
    %cst_8 = arith.constant 0.000000e+00 : f32
    %10 = vector.broadcast %cst_8 : f32 to vector<8x512xf32>
    %11 = arith.maximumf %9, %10 : vector<8x512xf32>
    %12 = arith.truncf %11 : vector<8x512xf32> to vector<8x512xbf16>
    %c0_9 = arith.constant 0 : index
    %c0_10 = arith.constant 0 : index
    %13 = vector.load %arg3[%c0_9, %c0_10] : memref<512x256xbf16, #tpu.memory_space<vmem>>, vector<512x256xbf16>
    %cst_11 = arith.constant dense<0.000000e+00> : vector<8x256xf32>
    %14 = tpu.matmul %12, %13, %cst_11 {dimension_numbers = #tpu.dot_dimension_numbers<[1], [0], [0], [1], [0, 0, 1, 1], [], []>} : vector<8x512xbf16>, vector<512x256xbf16>, vector<8x256xf32> -> vector<8x256xf32>
    %15 = vector.broadcast %3 : vector<1x256xf32> to vector<8x256xf32>
    %16 = arith.addf %14, %15 : vector<8x256xf32>
    %cst_12 = arith.constant 0.000000e+00 : f32
    %17 = vector.broadcast %cst_12 : f32 to vector<8x256xf32>
    %18 = arith.maximumf %16, %17 : vector<8x256xf32>
    %19 = arith.truncf %18 : vector<8x256xf32> to vector<8x256xbf16>
    %c0_13 = arith.constant 0 : index
    %c0_14 = arith.constant 0 : index
    %20 = vector.load %arg4[%c0_13, %c0_14] : memref<256x256xbf16, #tpu.memory_space<vmem>>, vector<256x256xbf16>
    %cst_15 = arith.constant dense<0.000000e+00> : vector<8x256xf32>
    %21 = tpu.matmul %19, %20, %cst_15 {dimension_numbers = #tpu.dot_dimension_numbers<[1], [0], [0], [1], [0, 0, 1, 1], [], []>} : vector<8x256xbf16>, vector<256x256xbf16>, vector<8x256xf32> -> vector<8x256xf32>
    %22 = vector.broadcast %4 : vector<1x256xf32> to vector<8x256xf32>
    %23 = arith.addf %21, %22 : vector<8x256xf32>
    %cst_16 = arith.constant 0.000000e+00 : f32
    %24 = vector.broadcast %cst_16 : f32 to vector<8x256xf32>
    %25 = arith.maximumf %23, %24 : vector<8x256xf32>
    %26 = arith.truncf %25 : vector<8x256xf32> to vector<8x256xbf16>
    %c0_17 = arith.constant 0 : index
    %c0_18 = arith.constant 0 : index
    %27 = vector.load %arg5[%c0_17, %c0_18] : memref<256x256xbf16, #tpu.memory_space<vmem>>, vector<256x256xbf16>
    %cst_19 = arith.constant dense<0.000000e+00> : vector<8x256xf32>
    %28 = tpu.matmul %26, %27, %cst_19 {dimension_numbers = #tpu.dot_dimension_numbers<[1], [0], [0], [1], [0, 0, 1, 1], [], []>} : vector<8x256xbf16>, vector<256x256xbf16>, vector<8x256xf32> -> vector<8x256xf32>
    %29 = vector.broadcast %5 : vector<1x256xf32> to vector<8x256xf32>
    %30 = arith.addf %28, %29 : vector<8x256xf32>
    %31 = vector.extract_strided_slice %30 {offsets = [0, 0], sizes = [8, 128], strides = [1, 1]} : vector<8x256xf32> to vector<8x128xf32>
    %cst_20 = arith.constant dense<0xFF800000> : vector<8xf32>
    %32 = vector.multi_reduction <maximumf>, %31, %cst_20 [1] : vector<8x128xf32> to vector<8xf32>
    %33 = vector.shape_cast %32 : vector<8xf32> to vector<8x1xf32>
    %34 = vector.broadcast %33 : vector<8x1xf32> to vector<8x128xf32>
    %35 = arith.subf %31, %34 : vector<8x128xf32>
    %36 = math.exp %35 : vector<8x128xf32>
    %cst_21 = arith.constant dense<0.000000e+00> : vector<8xf32>
    %37 = vector.multi_reduction <add>, %36, %cst_21 [1] : vector<8x128xf32> to vector<8xf32>
    %38 = vector.shape_cast %37 : vector<8xf32> to vector<8x1xf32>
    %39 = tpu.reciprocal %38 : vector<8x1xf32> -> vector<8x1xf32>
    %40 = vector.broadcast %39 : vector<8x1xf32> to vector<8x128xf32>
    %41 = arith.mulf %36, %40 : vector<8x128xf32>
    %c0_22 = arith.constant 0 : index
    %c0_23 = arith.constant 0 : index
    %42 = vector.load %arg7[%c0_22, %c0_23] : memref<8x256xf32, #tpu.memory_space<vmem>>, vector<8x128xf32>
    tpu.vector_store %arg7[%c0_22, %c0_23], %41 {strides = array<i32>} : memref<8x256xf32, #tpu.memory_space<vmem>>, vector<8x128xf32>,
    %43 = vector.extract_strided_slice %30 {offsets = [0, 128], sizes = [8, 128], strides = [1, 1]} : vector<8x256xf32> to vector<8x128xf32>
    %cst_24 = arith.constant dense<0xFF800000> : vector<8xf32>
    %44 = vector.multi_reduction <maximumf>, %43, %cst_24 [1] : vector<8x128xf32> to vector<8xf32>
    %45 = vector.shape_cast %44 : vector<8xf32> to vector<8x1xf32>
    %46 = vector.broadcast %45 : vector<8x1xf32> to vector<8x128xf32>
    %47 = arith.subf %43, %46 : vector<8x128xf32>
    %48 = math.exp %47 : vector<8x128xf32>
    %cst_25 = arith.constant dense<0.000000e+00> : vector<8xf32>
    %49 = vector.multi_reduction <add>, %48, %cst_25 [1] : vector<8x128xf32> to vector<8xf32>
    %50 = vector.shape_cast %49 : vector<8xf32> to vector<8x1xf32>
    %51 = tpu.reciprocal %50 : vector<8x1xf32> -> vector<8x1xf32>
    %52 = vector.broadcast %51 : vector<8x1xf32> to vector<8x128xf32>
    %53 = arith.mulf %48, %52 : vector<8x128xf32>
    %c0_26 = arith.constant 0 : index
    %c128 = arith.constant 128 : index
    %54 = vector.load %arg7[%c0_26, %c128] : memref<8x256xf32, #tpu.memory_space<vmem>>, vector<8x128xf32>
    tpu.vector_store %arg7[%c0_26, %c128], %53 {strides = array<i32>} : memref<8x256xf32, #tpu.memory_space<vmem>>, vector<8x128xf32>,
    return
  }
  func.func @transform_0(%arg0: i32) -> (i32, i32) {
    %c0_i32 = arith.constant 0 : i32
    %c0_i32_0 = arith.constant 0 : i32
    return %arg0, %c0_i32 : i32, i32
  }
  func.func @transform_1(%arg0: i32) -> (i32, i32) {
    %c0_i32 = arith.constant 0 : i32
    %c0_i32_0 = arith.constant 0 : i32
    %c0_i32_1 = arith.constant 0 : i32
    return %c0_i32, %c0_i32_0 : i32, i32
  }
  func.func @transform_2(%arg0: i32) -> (i32, i32) {
    %c0_i32 = arith.constant 0 : i32
    %c0_i32_0 = arith.constant 0 : i32
    %c0_i32_1 = arith.constant 0 : i32
    return %c0_i32, %c0_i32_0 : i32, i32
  }
  func.func @transform_3(%arg0: i32) -> (i32, i32) {
    %c0_i32 = arith.constant 0 : i32
    %c0_i32_0 = arith.constant 0 : i32
    %c0_i32_1 = arith.constant 0 : i32
    return %c0_i32, %c0_i32_0 : i32, i32
  }
  func.func @transform_4(%arg0: i32) -> (i32, i32) {
    %c0_i32 = arith.constant 0 : i32
    %c0_i32_0 = arith.constant 0 : i32
    %c0_i32_1 = arith.constant 0 : i32
    return %c0_i32, %c0_i32_0 : i32, i32
  }
  func.func @transform_5(%arg0: i32) -> (i32, i32) {
    %c0_i32 = arith.constant 0 : i32
    %c0_i32_0 = arith.constant 0 : i32
    %c0_i32_1 = arith.constant 0 : i32
    return %c0_i32, %c0_i32_0 : i32, i32
  }
  func.func @transform_6(%arg0: i32) -> (i32, i32) {
    %c0_i32 = arith.constant 0 : i32
    %c0_i32_0 = arith.constant 0 : i32
    return %arg0, %c0_i32 : i32, i32
  }
}

module attributes {stable_mosaic.version = 11 : i64} {
  func.func @_fc_kernel(%arg0: i32, %arg1: memref<8x8xf32, #tpu.memory_space<vmem>>, %arg2: memref<8x512xbf16, #tpu.memory_space<vmem>>, %arg3: memref<512x256xbf16, #tpu.memory_space<vmem>>, %arg4: memref<256x256xbf16, #tpu.memory_space<vmem>>, %arg5: memref<256x256xbf16, #tpu.memory_space<vmem>>, %arg6: memref<1x1280xf32, #tpu.memory_space<vmem>>, %arg7: memref<8x256xf32, #tpu.memory_space<vmem>>) attributes {dimension_semantics = [#tpu.dimension_semantics<parallel>], iteration_bounds = array<i64: 1>, scalar_prefetch = 0 : i64, scratch_operands = 0 : i64, tpu.core_type = #tpu.core_type<tc>, window_params = [{transform_indices = @transform_0, window_bounds = array<i64: 8, 8>}, {pipeline_mode = #tpu.pipeline_mode<synchronous>, transform_indices = @transform_1, window_bounds = array<i64: 8, 512>}, {pipeline_mode = #tpu.pipeline_mode<synchronous>, transform_indices = @transform_2, window_bounds = array<i64: 512, 256>}, {pipeline_mode = #tpu.pipeline_mode<synchronous>, transform_indices = @transform_3, window_bounds = array<i64: 256, 256>}, {pipeline_mode = #tpu.pipeline_mode<synchronous>, transform_indices = @transform_4, window_bounds = array<i64: 256, 256>}, {pipeline_mode = #tpu.pipeline_mode<synchronous>, transform_indices = @transform_5, window_bounds = array<i64: 1, 1280>}, {transform_indices = @transform_6, window_bounds = array<i64: 8, 256>}]} {
    %c0 = arith.constant 0 : index
    %c0_0 = arith.constant 0 : index
    %0 = vector.load %arg1[%c0, %c0_0] : memref<8x8xf32, #tpu.memory_space<vmem>>, vector<8x8xf32>
    %1 = arith.truncf %0 : vector<8x8xf32> to vector<8x8xbf16>
    %c0_1 = arith.constant 0 : index
    %c0_2 = arith.constant 0 : index
    %2 = vector.load %arg6[%c0_1, %c0_2] : memref<1x1280xf32, #tpu.memory_space<vmem>>, vector<1x512xf32>
    %c0_3 = arith.constant 0 : index
    %c512 = arith.constant 512 : index
    %3 = vector.load %arg6[%c0_3, %c512] : memref<1x1280xf32, #tpu.memory_space<vmem>>, vector<1x256xf32>
    %c0_4 = arith.constant 0 : index
    %c768 = arith.constant 768 : index
    %4 = vector.load %arg6[%c0_4, %c768] : memref<1x1280xf32, #tpu.memory_space<vmem>>, vector<1x256xf32>
    %c0_5 = arith.constant 0 : index
    %c1024 = arith.constant 1024 : index
    %5 = vector.load %arg6[%c0_5, %c1024] : memref<1x1280xf32, #tpu.memory_space<vmem>>, vector<1x256xf32>
    %c0_6 = arith.constant 0 : index
    %c0_7 = arith.constant 0 : index
    %6 = vector.load %arg2[%c0_6, %c0_7] : memref<8x512xbf16, #tpu.memory_space<vmem>>, vector<8x512xbf16>
    %cst = arith.constant dense<0.000000e+00> : vector<8x512xf32>
    %7 = tpu.matmul %1, %6, %cst {dimension_numbers = #tpu.dot_dimension_numbers<[1], [0], [0], [1], [0, 0, 1, 1], [], []>} : vector<8x8xbf16>, vector<8x512xbf16>, vector<8x512xf32> -> vector<8x512xf32>
    %8 = vector.broadcast %2 : vector<1x512xf32> to vector<8x512xf32>
    %9 = arith.addf %7, %8 : vector<8x512xf32>
    %cst_8 = arith.constant 0.000000e+00 : f32
    %10 = vector.broadcast %cst_8 : f32 to vector<8x512xf32>
    %11 = arith.maximumf %9, %10 : vector<8x512xf32>
    %12 = arith.truncf %11 : vector<8x512xf32> to vector<8x512xbf16>
    %c0_9 = arith.constant 0 : index
    %c0_10 = arith.constant 0 : index
    %13 = vector.load %arg3[%c0_9, %c0_10] : memref<512x256xbf16, #tpu.memory_space<vmem>>, vector<512x256xbf16>
    %cst_11 = arith.constant dense<0.000000e+00> : vector<8x256xf32>
    %14 = tpu.matmul %12, %13, %cst_11 {dimension_numbers = #tpu.dot_dimension_numbers<[1], [0], [0], [1], [0, 0, 1, 1], [], []>} : vector<8x512xbf16>, vector<512x256xbf16>, vector<8x256xf32> -> vector<8x256xf32>
    %15 = vector.broadcast %3 : vector<1x256xf32> to vector<8x256xf32>
    %16 = arith.addf %14, %15 : vector<8x256xf32>
    %cst_12 = arith.constant 0.000000e+00 : f32
    %17 = vector.broadcast %cst_12 : f32 to vector<8x256xf32>
    %18 = arith.maximumf %16, %17 : vector<8x256xf32>
    %19 = arith.truncf %18 : vector<8x256xf32> to vector<8x256xbf16>
    %c0_13 = arith.constant 0 : index
    %c0_14 = arith.constant 0 : index
    %20 = vector.load %arg4[%c0_13, %c0_14] : memref<256x256xbf16, #tpu.memory_space<vmem>>, vector<256x256xbf16>
    %cst_15 = arith.constant dense<0.000000e+00> : vector<8x256xf32>
    %21 = tpu.matmul %19, %20, %cst_15 {dimension_numbers = #tpu.dot_dimension_numbers<[1], [0], [0], [1], [0, 0, 1, 1], [], []>} : vector<8x256xbf16>, vector<256x256xbf16>, vector<8x256xf32> -> vector<8x256xf32>
    %22 = vector.broadcast %4 : vector<1x256xf32> to vector<8x256xf32>
    %23 = arith.addf %21, %22 : vector<8x256xf32>
    %cst_16 = arith.constant 0.000000e+00 : f32
    %24 = vector.broadcast %cst_16 : f32 to vector<8x256xf32>
    %25 = arith.maximumf %23, %24 : vector<8x256xf32>
    %26 = arith.truncf %25 : vector<8x256xf32> to vector<8x256xbf16>
    %c0_17 = arith.constant 0 : index
    %c0_18 = arith.constant 0 : index
    %27 = vector.load %arg5[%c0_17, %c0_18] : memref<256x256xbf16, #tpu.memory_space<vmem>>, vector<256x256xbf16>
    %cst_19 = arith.constant dense<0.000000e+00> : vector<8x256xf32>
    %28 = tpu.matmul %26, %27, %cst_19 {dimension_numbers = #tpu.dot_dimension_numbers<[1], [0], [0], [1], [0, 0, 1, 1], [], []>} : vector<8x256xbf16>, vector<256x256xbf16>, vector<8x256xf32> -> vector<8x256xf32>
    %29 = vector.broadcast %5 : vector<1x256xf32> to vector<8x256xf32>
    %30 = arith.addf %28, %29 : vector<8x256xf32>
    %31 = vector.extract_strided_slice %30 {offsets = [0, 0], sizes = [8, 128], strides = [1, 1]} : vector<8x256xf32> to vector<8x128xf32>
    %cst_20 = arith.constant dense<0xFF800000> : vector<8xf32>
    %32 = vector.multi_reduction <maximumf>, %31, %cst_20 [1] : vector<8x128xf32> to vector<8xf32>
    %33 = vector.shape_cast %32 : vector<8xf32> to vector<8x1xf32>
    %34 = vector.broadcast %33 : vector<8x1xf32> to vector<8x128xf32>
    %35 = arith.subf %31, %34 : vector<8x128xf32>
    %36 = math.exp %35 : vector<8x128xf32>
    %cst_21 = arith.constant dense<0.000000e+00> : vector<8xf32>
    %37 = vector.multi_reduction <add>, %36, %cst_21 [1] : vector<8x128xf32> to vector<8xf32>
    %38 = vector.shape_cast %37 : vector<8xf32> to vector<8x1xf32>
    %39 = tpu.reciprocal %38 : vector<8x1xf32> -> vector<8x1xf32>
    %40 = vector.broadcast %39 : vector<8x1xf32> to vector<8x128xf32>
    %41 = arith.mulf %36, %40 : vector<8x128xf32>
    %c0_22 = arith.constant 0 : index
    %c0_23 = arith.constant 0 : index
    %42 = vector.load %arg7[%c0_22, %c0_23] : memref<8x256xf32, #tpu.memory_space<vmem>>, vector<8x128xf32>
    tpu.vector_store %arg7[%c0_22, %c0_23], %41 {strides = array<i32>} : memref<8x256xf32, #tpu.memory_space<vmem>>, vector<8x128xf32>,
    %43 = vector.extract_strided_slice %30 {offsets = [0, 128], sizes = [8, 128], strides = [1, 1]} : vector<8x256xf32> to vector<8x128xf32>
    %cst_24 = arith.constant dense<0xFF800000> : vector<8xf32>
    %44 = vector.multi_reduction <maximumf>, %43, %cst_24 [1] : vector<8x128xf32> to vector<8xf32>
    %45 = vector.shape_cast %44 : vector<8xf32> to vector<8x1xf32>
    %46 = vector.broadcast %45 : vector<8x1xf32> to vector<8x128xf32>
    %47 = arith.subf %43, %46 : vector<8x128xf32>
    %48 = math.exp %47 : vector<8x128xf32>
    %cst_25 = arith.constant dense<0.000000e+00> : vector<8xf32>
    %49 = vector.multi_reduction <add>, %48, %cst_25 [1] : vector<8x128xf32> to vector<8xf32>
    %50 = vector.shape_cast %49 : vector<8xf32> to vector<8x1xf32>
    %51 = tpu.reciprocal %50 : vector<8x1xf32> -> vector<8x1xf32>
    %52 = vector.broadcast %51 : vector<8x1xf32> to vector<8x128xf32>
    %53 = arith.mulf %48, %52 : vector<8x128xf32>
    %c0_26 = arith.constant 0 : index
    %c128 = arith.constant 128 : index
    %54 = vector.load %arg7[%c0_26, %c128] : memref<8x256xf32, #tpu.memory_space<vmem>>, vector<8x128xf32>
    tpu.vector_store %arg7[%c0_26, %c128], %53 {strides = array<i32>} : memref<8x256xf32, #tpu.memory_space<vmem>>, vector<8x128xf32>,
    return
  }
  func.func @transform_0(%arg0: i32) -> (i32, i32) {
    %c0_i32 = arith.constant 0 : i32
    %c0_i32_0 = arith.constant 0 : i32
    return %arg0, %c0_i32 : i32, i32
  }
  func.func @transform_1(%arg0: i32) -> (i32, i32) {
    %c0_i32 = arith.constant 0 : i32
    %c0_i32_0 = arith.constant 0 : i32
    %c0_i32_1 = arith.constant 0 : i32
    return %c0_i32, %c0_i32_0 : i32, i32
  }
  func.func @transform_2(%arg0: i32) -> (i32, i32) {
    %c0_i32 = arith.constant 0 : i32
    %c0_i32_0 = arith.constant 0 : i32
    %c0_i32_1 = arith.constant 0 : i32
    return %c0_i32, %c0_i32_0 : i32, i32
  }
  func.func @transform_3(%arg0: i32) -> (i32, i32) {
    %c0_i32 = arith.constant 0 : i32
    %c0_i32_0 = arith.constant 0 : i32
    %c0_i32_1 = arith.constant 0 : i32
    return %c0_i32, %c0_i32_0 : i32, i32
  }
  func.func @transform_4(%arg0: i32) -> (i32, i32) {
    %c0_i32 = arith.constant 0 : i32
    %c0_i32_0 = arith.constant 0 : i32
    %c0_i32_1 = arith.constant 0 : i32
    return %c0_i32, %c0_i32_0 : i32, i32
  }
  func.func @transform_5(%arg0: i32) -> (i32, i32) {
    %c0_i32 = arith.constant 0 : i32
    %c0_i32_0 = arith.constant 0 : i32
    %c0_i32_1 = arith.constant 0 : i32
    return %c0_i32, %c0_i32_0 : i32, i32
  }
  func.func @transform_6(%arg0: i32) -> (i32, i32) {
    %c0_i32 = arith.constant 0 : i32
    %c0_i32_0 = arith.constant 0 : i32
    return %arg0, %c0_i32 : i32, i32
  }
}

</mosaic_0001>

<bundles_post_ra>
// kernel: tpu_custom_call.1
= control target key start
LH: loop header
LB: loop body
LE: loop exit
PB: predicated region body
PF: predicated region fallthrough
CT: control target
= control target key end

     0   :  { %11 = vsyncpa [#allocation3], 0  ;;  %s2194_s0 = inlined_call_operand.hbm [shape: f32[8,8], index: 0, kind: input, shape index: {}]   ;;  %s2195_s1 = inlined_call_operand.hbm [shape: bf16[8,512], index: 1, kind: input, shape index: {}]   ;;  %s2196_s2 = inlined_call_operand.hbm [shape: bf16[512,256], index: 2, kind: input, shape index: {}]   ;;  %s2197_s3 = inlined_call_operand.hbm [shape: bf16[256,256], index: 3, kind: input, shape index: {}]   ;;  %s2198_s4 = inlined_call_operand.hbm [shape: bf16[256,256], index: 4, kind: input, shape index: {}]   ;;  %s2199_s5 = inlined_call_operand.hbm [shape: f32[1,1280], index: 5, kind: input, shape index: {}]   ;;  %s2200_s6 = inlined_call_operand.hbm [shape: f32[8,256], index: 6, kind: output, shape index: {}]  }
   0x1   :  { %12 = vsyncpa [#allocation6], 0 }
   0x2   :  { %13 = vsyncpa [#allocation9], 0 }
   0x3   :  { %14 = vsyncpa [#allocation12], 0  ;;  %s32_s23 = sshll.u32 %s2195_s1, 4  ;;  %s33_s23 = int_to_ptr.hbm [resolvable:$true] %s32_s23 }
   0x4   :  { %15 = vsyncpa [#allocation4], 0  ;;  %s2121_s24 = smov [#allocation5]   ;;  %s55_s28 = sshll.u32 %s2197_s3, 4  ;;  %s56_s28 = int_to_ptr.hbm [resolvable:$true] %s55_s28 }
   0x5   :  { %s34_s25 = sshll.u32 %s2121_s24, 4  ;;  %s2122_s29 = smov [#allocation8]   ;;  %s35_s25 = int_to_ptr.vmem [resolvable:$true] %s34_s25 }
   0x6   :  { %37 = dma.hbm_to_vmem [thread:$0]  %s33_s23, 256, %s35_s25, [#allocation6]  }
   0x7   :  { %s57_s30 = sshll.u32 %s2122_s29, 4  ;;  %s21_s9 = sshll.u32 %s2194_s0, 4  ;;  %s58_s30 = int_to_ptr.vmem [resolvable:$true] %s57_s30  ;;  %s22_s9 = int_to_ptr.hbm [resolvable:$true] %s21_s9 }
   0x8   :  { %s2123_s1 = smov 128   ;;  %s2124_s10 = smov 8  }
   0x9   :  { %63 = dma.hbm_to_vmem [thread:$0]  %s56_s28, 4096, %s58_s30, [#allocation9], %s2123_s1, %s2123_s1, %s2124_s10  }
   0xa   :  { %s42_s13 = sshll.u32 %s2196_s2, 4  ;;  %s2125_s14 = smov [#allocation2]   ;;  %s43_s13 = int_to_ptr.hbm [resolvable:$true] %s42_s13 }
   0xb   :  { %s23_s15 = sshll.u32 %s2125_s14, 4  ;;  %s2126_s3 = smov [#allocation7]   ;;  %s24_s15 = int_to_ptr.vmem [resolvable:$true] %s23_s15 }
   0xc   :  { %26 = dma.hbm_to_vmem [thread:$0]  %s22_s9, 128, %s24_s15, [#allocation3]  }
   0xd   :  { %s44_s16 = sshll.u32 %s2126_s3, 4  ;;  %s68_s0 = sshll.u32 %s2198_s4, 4  ;;  %s45_s16 = int_to_ptr.vmem [resolvable:$true] %s44_s16  ;;  %s69_s0 = int_to_ptr.hbm [resolvable:$true] %s68_s0 }
   0xe   :  { %50 = dma.hbm_to_vmem [thread:$0]  %s43_s13, 8192, %s45_s16, [#allocation6], %s2123_s1, %s2123_s1, %s2124_s10  }
   0xf   :  { %s82_s21 = sshll.u32 %s2199_s5, 4  ;;  %s2127_s22 = smov [#allocation10]   ;;  %s83_s21 = int_to_ptr.hbm [resolvable:$true] %s82_s21 }
  0x10   :  { %s70_s2 = sshll.u32 %s2127_s22, 4  ;;  %s2128_s23 = smov [#allocation11]   ;;  %s71_s2 = int_to_ptr.vmem [resolvable:$true] %s70_s2 }
  0x11   :  { %76 = dma.hbm_to_vmem [thread:$0]  %s69_s0, 4096, %s71_s2, [#allocation9], %s2123_s1, %s2123_s1, %s2124_s10  }
  0x12   :  { %s84_s24 = sshll.u32 %s2128_s23, 4  ;;  %s85_s24 = int_to_ptr.vmem [resolvable:$true] %s84_s24 }
  0x13   :  { %87 = dma.hbm_to_vmem [thread:$0]  %s83_s21, 160, %s85_s24, [#allocation12]  }
  0x14   :  { %2111 = dma.done.wait [#allocation3], 128  }
  0x15   :  { %2112 = vsyncadd [#allocation3], 4294967168 }
  0x16   :  { %2113 = dma.done.wait [#allocation6], 8448  }
  0x17   :  { %2114 = vsyncadd [#allocation6], 4294958848 }
  0x18   :  { %2115 = dma.done.wait [#allocation9], 8192  }
  0x19   :  { %2116 = vsyncadd [#allocation9], 4294959104 }
  0x1a   :  { %2117 = dma.done.wait [#allocation12], 160  }
  0x1b   :  { %2118 = vsyncadd [#allocation12], 4294967136  ;;  %v119_v0 = vld [vmem:[#allocation5] sm:$0xff]  ;;  %v120_v1 = vld [vmem:[#allocation5 + $0x8] sm:$0xff]  ;;  %vm144_vm0 = vcmask 1043456   ;;  %vm140_vm1 = vcmask 64512  }
  0x1c   :  { %v113_v2 = vld [vmem:[#allocation2] sm:$0xff]  ;;  %v132_v3 = vunpack.c.l.b16 %v119_v0  ;;  %v133_v4 = vunpack.c.h.b16 %v119_v0  ;;  %v134_v5 = vunpack.c.l.b16 %v120_v1  ;;  %v135_v6 = vunpack.c.h.b16 %v120_v1  ;;  %v1344_v7 = vld [vmem:[#allocation7 + $0x70] sm:$0xf]  ;;  %v1813_v8 = vld [vmem:[#allocation7 + $0x74] sm:$0xf0]  ;;  %s2129_s4 = smov [#allocation13]  }
  0x1d   :  { %v1408_v9 = vld [vmem:[#allocation7 + $0xf0] sm:$0xf]  ;;  %v1829_v10 = vld [vmem:[#allocation7 + $0xf4] sm:$0xf0]  ;;  %v1336_v15 = vld [vmem:[#allocation7 + $0x60] sm:$0xf]  ;;  %v114_v19 = vpack.c.bf16 %v113_v2, %v113_v2  ;;  %v1345_v20 = vor.u32 %v1813_v8, %v1344_v7 }
  0x1e   :  { %v136_v11 = vpack.c.b16 %v132_v3, %v132_v3  ;;  %v137_v12 = vpack.c.b16 %v133_v4, %v133_v4  ;;  %v138_v13 = vpack.c.b16 %v134_v5, %v134_v5  ;;  %v139_v14 = vpack.c.b16 %v135_v6, %v135_v6  ;;  %v1811_v16 = vld [vmem:[#allocation7 + $0x64] sm:$0xf0]  ;;  %v1400_v17 = vld [vmem:[#allocation7 + $0xe0] sm:$0xf]  ;;  %v1472_v18 = vld [vmem:[#allocation7 + $0x170] sm:$0xf] }
  0x1f   :  { %v1409_v21 = vor.u32 %v1829_v10, %v1408_v9  ;;  %v1845_v22 = vld [vmem:[#allocation7 + $0x174] sm:$0xf0]  ;;  %v1536_v23 = vld [vmem:[#allocation7 + $0x1f0] sm:$0xf]  ;;  %v1827_v29 = vld [vmem:[#allocation7 + $0xe4] sm:$0xf0]  ;;  %v1337_v34 = vor.u32 %v1811_v16, %v1336_v15 }
  0x20   :  { %v1861_v24 = vld [vmem:[#allocation7 + $0x1f4] sm:$0xf0]  ;;  %v146_v25 = vsel %vm144_vm0, %v136_v11, 0  ;;  %v149_v26 = vsel %vm144_vm0, %v137_v12, 0  ;;  %v152_v27 = vsel %vm144_vm0, %v138_v13, 0  ;;  %v155_v28 = vsel %vm144_vm0, %v139_v14, 0 }
  0x21   :  { %164 = vmatpush.bf16.msra.mxu0 %v146_v25  ;;  %177 = vmatpush.bf16.msra.mxu1 %v149_v26  ;;  %v1473_v30 = vor.u32 %v1845_v22, %v1472_v18  ;;  %v1537_v31 = vor.u32 %v1861_v24, %v1536_v23  ;;  %v1328_v32 = vld [vmem:[#allocation7 + $0x50] sm:$0xf]  ;;  %v1464_v33 = vld [vmem:[#allocation7 + $0x160] sm:$0xf]  ;;  %v1401_v35 = vor.u32 %v1827_v29, %v1400_v17  ;;  %v1843_v36 = vld [vmem:[#allocation7 + $0x164] sm:$0xf0] }
  0x22   :  { %190 = vmatpush.bf16.msra.mxu2 %v152_v27  ;;  %203 = vmatpush.bf16.msra.mxu3 %v155_v28  ;;  %v1528_v37 = vld [vmem:[#allocation7 + $0x1e0] sm:$0xf]  ;;  %v1859_v38 = vld [vmem:[#allocation7 + $0x1e4] sm:$0xf0]  ;;  %v1809_v39 = vld [vmem:[#allocation7 + $0x54] sm:$0xf0]  ;;  %v1465_v42 = vor.u32 %v1843_v36, %v1464_v33 }
  0x23   :  { %v1392_v40 = vld [vmem:[#allocation7 + $0xd0] sm:$0xf]  ;;  %v1825_v41 = vld [vmem:[#allocation7 + $0xd4] sm:$0xf0]  ;;  %v1529_v43 = vor.u32 %v1859_v38, %v1528_v37  ;;  %v1320_v44 = vld [vmem:[#allocation7 + $0x40] sm:$0xf]  ;;  %v1329_v46 = vor.u32 %v1809_v39, %v1328_v32 }
  0x24   :  { %1282 = vmatmul.msk.bf16.vlgmr.msra.gmra.mxu0 %vm140_vm1, %v114_v19  ;;  %1283 = vmatmul.msk.bf16.vlgmr.msra.gmra.mxu1 %vm140_vm1, %v114_v19  ;;  %v1456_v45 = vld [vmem:[#allocation7 + $0x150] sm:$0xf]  ;;  %v1393_v47 = vor.u32 %v1825_v41, %v1392_v40  ;;  %v1841_v48 = vld [vmem:[#allocation7 + $0x154] sm:$0xf0]  ;;  %v1807_v51 = vld [vmem:[#allocation7 + $0x44] sm:$0xf0] }
  0x25   :  { %606 = vmatpush.bf16.msrb.mxu0 %v1345_v20  ;;  %619 = vmatpush.bf16.msrb.mxu1 %v1409_v21  ;;  %v1520_v49 = vld [vmem:[#allocation7 + $0x1d0] sm:$0xf]  ;;  %v1857_v50 = vld [vmem:[#allocation7 + $0x1d4] sm:$0xf0]  ;;  %v1384_v52 = vld [vmem:[#allocation7 + $0xc0] sm:$0xf]  ;;  %v1457_v54 = vor.u32 %v1841_v48, %v1456_v45  ;;  %v1321_v58 = vor.u32 %v1807_v51, %v1320_v44 }
  0x26   :  { %1284 = vmatmul.msk.bf16.vlgmr.msra.gmra.mxu2 %vm140_vm1, %v114_v19  ;;  %1285 = vmatmul.msk.bf16.vlgmr.msra.gmra.mxu3 %vm140_vm1, %v114_v19  ;;  %v1823_v53 = vld [vmem:[#allocation7 + $0xc4] sm:$0xf0]  ;;  %v1521_v55 = vor.u32 %v1857_v50, %v1520_v49  ;;  %v1312_v56 = vld [vmem:[#allocation7 + $0x30] sm:$0xf]  ;;  %v1448_v57 = vld [vmem:[#allocation7 + $0x140] sm:$0xf] }
  0x27   :  { %632 = vmatpush.bf16.msrb.mxu2 %v1473_v30  ;;  %645 = vmatpush.bf16.msrb.mxu3 %v1537_v31  ;;  %v1385_v59 = vor.u32 %v1823_v53, %v1384_v52  ;;  %v1839_v60 = vld [vmem:[#allocation7 + $0x144] sm:$0xf0]  ;;  %v1512_v61 = vld [vmem:[#allocation7 + $0x1c0] sm:$0xf]  ;;  %v1805_v63 = vld [vmem:[#allocation7 + $0x34] sm:$0xf0] }
  0x28   :  { %v1855_v62 = vld [vmem:[#allocation7 + $0x1c4] sm:$0xf0]  ;;  %v1376_v0 = vld [vmem:[#allocation7 + $0xb0] sm:$0xf]  ;;  %v1821_v1 = vld [vmem:[#allocation7 + $0xb4] sm:$0xf0]  ;;  %v1449_v2 = vor.u32 %v1839_v60, %v1448_v57  ;;  %v1313_v6 = vor.u32 %v1805_v63, %v1312_v56 }
  0x29   :  { %607 = vmatpush.bf16.msrb.mxu0 %v1337_v34  ;;  %620 = vmatpush.bf16.msrb.mxu1 %v1401_v35  ;;  %v1513_v3 = vor.u32 %v1855_v62, %v1512_v61  ;;  %v1304_v4 = vld [vmem:[#allocation7 + $0x20] sm:$0xf]  ;;  %v1440_v5 = vld [vmem:[#allocation7 + $0x130] sm:$0xf]  ;;  %v1377_v7 = vor.u32 %v1821_v1, %v1376_v0  ;;  %v1837_v8 = vld [vmem:[#allocation7 + $0x134] sm:$0xf0] }
  0x2a   :  { %v1504_v9 = vld [vmem:[#allocation7 + $0x1b0] sm:$0xf]  ;;  %v1853_v10 = vld [vmem:[#allocation7 + $0x1b4] sm:$0xf0]  ;;  %v1803_v11 = vld [vmem:[#allocation7 + $0x24] sm:$0xf0]  ;;  %v1441_v14 = vor.u32 %v1837_v8, %v1440_v5 }
  0x2b   :  { %633 = vmatpush.bf16.msrb.mxu2 %v1465_v42  ;;  %646 = vmatpush.bf16.msrb.mxu3 %v1529_v43  ;;  %v1368_v12 = vld [vmem:[#allocation7 + $0xa0] sm:$0xf]  ;;  %v1819_v13 = vld [vmem:[#allocation7 + $0xa4] sm:$0xf0]  ;;  %v1505_v15 = vor.u32 %v1853_v10, %v1504_v9  ;;  %v1296_v16 = vld [vmem:[#allocation7 + $0x10] sm:$0xf]  ;;  %v1305_v18 = vor.u32 %v1803_v11, %v1304_v4 }
  0x2c   :  { %v1432_v17 = vld [vmem:[#allocation7 + $0x120] sm:$0xf]  ;;  %v1369_v19 = vor.u32 %v1819_v13, %v1368_v12  ;;  %v1835_v20 = vld [vmem:[#allocation7 + $0x124] sm:$0xf0]  ;;  %v1801_v23 = vld [vmem:[#allocation7 + $0x14] sm:$0xf0] }
  0x2d   :  { %608 = vmatpush.bf16.msrb.mxu0 %v1329_v46  ;;  %621 = vmatpush.bf16.msrb.mxu1 %v1393_v47  ;;  %v1496_v21 = vld [vmem:[#allocation7 + $0x1a0] sm:$0xf]  ;;  %v1851_v22 = vld [vmem:[#allocation7 + $0x1a4] sm:$0xf0]  ;;  %v1360_v24 = vld [vmem:[#allocation7 + $0x90] sm:$0xf]  ;;  %v1433_v26 = vor.u32 %v1835_v20, %v1432_v17  ;;  %v1297_v31 = vor.u32 %v1801_v23, %v1296_v16 }
  0x2e   :  { %v1817_v25 = vld [vmem:[#allocation7 + $0x94] sm:$0xf0]  ;;  %v1497_v27 = vor.u32 %v1851_v22, %v1496_v21  ;;  %v1288_v28 = vld [vmem:[#allocation7] sm:$0xf]  ;;  %v1799_v29 = vld [vmem:[#allocation7 + $0x4] sm:$0xf0] }
  0x2f   :  { %634 = vmatpush.bf16.msrb.mxu2 %v1457_v54  ;;  %647 = vmatpush.bf16.msrb.mxu3 %v1521_v55  ;;  %v1424_v30 = vld [vmem:[#allocation7 + $0x110] sm:$0xf]  ;;  %v1361_v32 = vor.u32 %v1817_v25, %v1360_v24  ;;  %v1833_v33 = vld [vmem:[#allocation7 + $0x114] sm:$0xf0]  ;;  %v1352_v36 = vld [vmem:[#allocation7 + $0x80] sm:$0xf]  ;;  %v1289_v46 = vor.u32 %v1799_v29, %v1288_v28 }
  0x30   :  { %v1488_v34 = vld [vmem:[#allocation7 + $0x190] sm:$0xf]  ;;  %v1849_v35 = vld [vmem:[#allocation7 + $0x194] sm:$0xf0]  ;;  %v1815_v37 = vld [vmem:[#allocation7 + $0x84] sm:$0xf0]  ;;  %v1425_v42 = vor.u32 %v1833_v33, %v1424_v30 }
  0x31   :  { %609 = vmatpush.bf16.msrb.mxu0 %v1321_v58  ;;  %622 = vmatpush.bf16.msrb.mxu1 %v1385_v59  ;;  %v1812_v38 = vld [vmem:[#allocation7 + $0x74] sm:$0xf]  ;;  %v1346_v39 = vld [vmem:[#allocation7 + $0x78] sm:$0xf0]  ;;  %v1489_v43 = vor.u32 %v1849_v35, %v1488_v34  ;;  %v1416_v44 = vld [vmem:[#allocation7 + $0x100] sm:$0xf]  ;;  %v1353_v47 = vor.u32 %v1815_v37, %v1352_v36 }
  0x32   :  { %v1828_v40 = vld [vmem:[#allocation7 + $0xf4] sm:$0xf]  ;;  %v1410_v41 = vld [vmem:[#allocation7 + $0xf8] sm:$0xf0]  ;;  %v1831_v45 = vld [vmem:[#allocation7 + $0x104] sm:$0xf0]  ;;  %v1349_v52 = vor.u32 %v1812_v38, %v1346_v39 }
  0x33   :  { %635 = vmatpush.bf16.msrb.mxu2 %v1449_v2  ;;  %648 = vmatpush.bf16.msrb.mxu3 %v1513_v3  ;;  %v1810_v48 = vld [vmem:[#allocation7 + $0x64] sm:$0xf]  ;;  %v1480_v49 = vld [vmem:[#allocation7 + $0x180] sm:$0xf]  ;;  %v1847_v50 = vld [vmem:[#allocation7 + $0x184] sm:$0xf0]  ;;  %v1413_v53 = vor.u32 %v1828_v40, %v1410_v41  ;;  %v1417_v60 = vor.u32 %v1831_v45, %v1416_v44 }
  0x34   :  { %v1844_v51 = vld [vmem:[#allocation7 + $0x174] sm:$0xf]  ;;  %v1474_v54 = vld [vmem:[#allocation7 + $0x178] sm:$0xf0]  ;;  %v1338_v57 = vld [vmem:[#allocation7 + $0x68] sm:$0xf0]  ;;  %v1481_v61 = vor.u32 %v1847_v50, %v1480_v49 }
  0x35   :  { %610 = vmatpush.bf16.msrb.mxu0 %v1313_v6  ;;  %623 = vmatpush.bf16.msrb.mxu1 %v1377_v7  ;;  %v1860_v55 = vld [vmem:[#allocation7 + $0x1f4] sm:$0xf]  ;;  %v1538_v56 = vld [vmem:[#allocation7 + $0x1f8] sm:$0xf0]  ;;  %v1826_v58 = vld [vmem:[#allocation7 + $0xe4] sm:$0xf]  ;;  %v1477_v62 = vor.u32 %v1844_v51, %v1474_v54  ;;  %v1341_v0 = vor.u32 %v1810_v48, %v1338_v57 }
  0x36   :  { %v1402_v59 = vld [vmem:[#allocation7 + $0xe8] sm:$0xf0]  ;;  %v1541_v63 = vor.u32 %v1860_v55, %v1538_v56  ;;  %v1808_v2 = vld [vmem:[#allocation7 + $0x54] sm:$0xf]  ;;  %v1330_v3 = vld [vmem:[#allocation7 + $0x58] sm:$0xf0] }
  0x37   :  { %636 = vmatpush.bf16.msrb.mxu2 %v1441_v14  ;;  %649 = vmatpush.bf16.msrb.mxu3 %v1505_v15  ;;  %v1405_v1 = vor.u32 %v1826_v58, %v1402_v59  ;;  %v1824_v4 = vld [vmem:[#allocation7 + $0xd4] sm:$0xf]  ;;  %v1333_v5 = vor.u32 %v1808_v2, %v1330_v3  ;;  %v1394_v6 = vld [vmem:[#allocation7 + $0xd8] sm:$0xf0]  ;;  %v1842_v8 = vld [vmem:[#allocation7 + $0x164] sm:$0xf] }
  0x38   :  { %v1397_v7 = vor.u32 %v1824_v4, %v1394_v6  ;;  %v1466_v9 = vld [vmem:[#allocation7 + $0x168] sm:$0xf0]  ;;  %v1858_v11 = vld [vmem:[#allocation7 + $0x1e4] sm:$0xf]  ;;  %v1840_v20 = vld [vmem:[#allocation7 + $0x154] sm:$0xf] }
  0x39   :  { %611 = vmatpush.bf16.msrb.mxu0 %v1305_v18  ;;  %624 = vmatpush.bf16.msrb.mxu1 %v1369_v19  ;;  %v1469_v10 = vor.u32 %v1842_v8, %v1466_v9  ;;  %v1530_v12 = vld [vmem:[#allocation7 + $0x1e8] sm:$0xf0]  ;;  %v1806_v14 = vld [vmem:[#allocation7 + $0x44] sm:$0xf]  ;;  %v1458_v21 = vld [vmem:[#allocation7 + $0x158] sm:$0xf0] }
  0x3a   :  { %v1533_v13 = vor.u32 %v1858_v11, %v1530_v12  ;;  %v1322_v15 = vld [vmem:[#allocation7 + $0x48] sm:$0xf0]  ;;  %v1822_v16 = vld [vmem:[#allocation7 + $0xc4] sm:$0xf]  ;;  %v1856_v22 = vld [vmem:[#allocation7 + $0x1d4] sm:$0xf]  ;;  %v1461_v23 = vor.u32 %v1840_v20, %v1458_v21 }
  0x3b   :  { %637 = vmatpush.bf16.msrb.mxu2 %v1433_v26  ;;  %650 = vmatpush.bf16.msrb.mxu3 %v1497_v27  ;;  %v1325_v17 = vor.u32 %v1806_v14, %v1322_v15  ;;  %v1386_v18 = vld [vmem:[#allocation7 + $0xc8] sm:$0xf0]  ;;  %v1522_v24 = vld [vmem:[#allocation7 + $0x1d8] sm:$0xf0]  ;;  %v1804_v26 = vld [vmem:[#allocation7 + $0x34] sm:$0xf] }
  0x3c   :  { %v1389_v19 = vor.u32 %v1822_v16, %v1386_v18  ;;  %v1525_v25 = vor.u32 %v1856_v22, %v1522_v24  ;;  %v1314_v27 = vld [vmem:[#allocation7 + $0x38] sm:$0xf0]  ;;  %v1820_v29 = vld [vmem:[#allocation7 + $0xb4] sm:$0xf]  ;;  %v1450_v33 = vld [vmem:[#allocation7 + $0x148] sm:$0xf0] }
  0x3d   :  { %612 = vmatpush.bf16.msrb.mxu0 %v1297_v31  ;;  %625 = vmatpush.bf16.msrb.mxu1 %v1361_v32  ;;  %v1317_v28 = vor.u32 %v1804_v26, %v1314_v27  ;;  %v1378_v30 = vld [vmem:[#allocation7 + $0xb8] sm:$0xf0]  ;;  %v1838_v32 = vld [vmem:[#allocation7 + $0x144] sm:$0xf]  ;;  %v1514_v36 = vld [vmem:[#allocation7 + $0x1c8] sm:$0xf0] }
  0x3e   :  { %v1381_v31 = vor.u32 %v1820_v29, %v1378_v30  ;;  %v1854_v34 = vld [vmem:[#allocation7 + $0x1c4] sm:$0xf]  ;;  %v1453_v35 = vor.u32 %v1838_v32, %v1450_v33  ;;  %v1306_v39 = vld [vmem:[#allocation7 + $0x28] sm:$0xf0]  ;;  %v1836_v44 = vld [vmem:[#allocation7 + $0x134] sm:$0xf] }
  0x3f   :  { %638 = vmatpush.bf16.msrb.mxu2 %v1425_v42  ;;  %651 = vmatpush.bf16.msrb.mxu3 %v1489_v43  ;;  %v1517_v37 = vor.u32 %v1854_v34, %v1514_v36  ;;  %v1802_v38 = vld [vmem:[#allocation7 + $0x24] sm:$0xf]  ;;  %v1370_v42 = vld [vmem:[#allocation7 + $0xa8] sm:$0xf0]  ;;  %v1442_v45 = vld [vmem:[#allocation7 + $0x138] sm:$0xf0] }
  0x40   :  { %v1818_v40 = vld [vmem:[#allocation7 + $0xa4] sm:$0xf]  ;;  %v1309_v41 = vor.u32 %v1802_v38, %v1306_v39  ;;  %v1506_v48 = vld [vmem:[#allocation7 + $0x1b8] sm:$0xf0]  ;;  %v1800_v50 = vld [vmem:[#allocation7 + $0x14] sm:$0xf] }
  0x41   :  { %613 = vmatpush.bf16.msrb.mxu0 %v1289_v46  ;;  %626 = vmatpush.bf16.msrb.mxu1 %v1353_v47  ;;  %v1373_v43 = vor.u32 %v1818_v40, %v1370_v42  ;;  %v1852_v46 = vld [vmem:[#allocation7 + $0x1b4] sm:$0xf]  ;;  %v1445_v47 = vor.u32 %v1836_v44, %v1442_v45  ;;  %v1298_v51 = vld [vmem:[#allocation7 + $0x18] sm:$0xf0]  ;;  %v1834_v55 = vld [vmem:[#allocation7 + $0x124] sm:$0xf] }
  0x42   :  { %v1509_v49 = vor.u32 %v1852_v46, %v1506_v48  ;;  %v1362_v54 = vld [vmem:[#allocation7 + $0x98] sm:$0xf0]  ;;  %v1434_v56 = vld [vmem:[#allocation7 + $0x128] sm:$0xf0]  ;;  %v1850_v59 = vld [vmem:[#allocation7 + $0x1a4] sm:$0xf] }
  0x43   :  { %639 = vmatpush.bf16.msrb.mxu2 %v1417_v60  ;;  %652 = vmatpush.bf16.msrb.mxu3 %v1481_v61  ;;  %v1437_v58 = vor.u32 %v1834_v55, %v1434_v56  ;;  %v1498_v60 = vld [vmem:[#allocation7 + $0x1a8] sm:$0xf0]  ;;  %v1798_v61 = vld [vmem:[#allocation7 + $0x4] sm:$0xf]  ;;  %v1832_v4 = vld [vmem:[#allocation7 + $0x114] sm:$0xf] }
  0x44   :  { %v1848_v6 = vld [vmem:[#allocation7 + $0x194] sm:$0xf]  ;;  %v1490_v8 = vld [vmem:[#allocation7 + $0x198] sm:$0xf0]  ;;  %v1418_v11 = vld [vmem:[#allocation7 + $0x108] sm:$0xf0] }
  0x45   :  { %658 = vmatpush.bf16.msra.mxu0 %v1349_v52  ;;  %671 = vmatpush.bf16.msra.mxu1 %v1413_v53  ;;  %v1816_v52 = vld [vmem:[#allocation7 + $0x94] sm:$0xf]  ;;  %v1301_v53 = vor.u32 %v1800_v50, %v1298_v51  ;;  %v1493_v9 = vor.u32 %v1848_v6, %v1490_v8  ;;  %v1846_v12 = vld [vmem:[#allocation7 + $0x184] sm:$0xf]  ;;  %v1482_v14 = vld [vmem:[#allocation7 + $0x188] sm:$0xf0] }
  0x46   :  { %v1365_v57 = vor.u32 %v1816_v52, %v1362_v54  ;;  %v1485_v15 = vor.u32 %v1846_v12, %v1482_v14  ;;  %v115_v16 = vld [vmem:[#allocation11] sm:$0xf]  ;;  %v1877_v24 = vld [vmem:[#allocation8 + $0x74] sm:$0xf0]  ;;  %v1875_v33 = vld [vmem:[#allocation8 + $0x64] sm:$0xf0] }
  0x47   :  { %684 = vmatpush.bf16.msra.mxu2 %v1477_v62  ;;  %697 = vmatpush.bf16.msra.mxu3 %v1541_v63  ;;  %v1501_v62 = vor.u32 %v1850_v59, %v1498_v60  ;;  %v1290_v63 = vld [vmem:[#allocation7 + $0x8] sm:$0xf0]  ;;  %v123_v18 = vperm.slane %v115_v16, 1  ;;  %v124_v27 = vperm.slane %v115_v16, 2  ;;  %v1592_v32 = vld [vmem:[#allocation8 + $0x60] sm:$0xf] }
  0x48   :  { %v1293_v2 = vor.u32 %v1798_v61, %v1290_v63  ;;  %v1876_v40 = vld [vmem:[#allocation8 + $0x74] sm:$0xf]  ;;  %v1593_v42 = vor.u32 %v1875_v33, %v1592_v32  ;;  %v1873_v44 = vld [vmem:[#allocation8 + $0x54] sm:$0xf0]  ;;  %v1874_v50 = vld [vmem:[#allocation8 + $0x64] sm:$0xf] }
  0x49   :  { %659 = vmatpush.bf16.msra.mxu0 %v1341_v0  ;;  %672 = vmatpush.bf16.msra.mxu1 %v1405_v1  ;;  %v1814_v0 = vld [vmem:[#allocation7 + $0x84] sm:$0xf]  ;;  %v1354_v1 = vld [vmem:[#allocation7 + $0x88] sm:$0xf0]  ;;  %v1872_v56 = vld [vmem:[#allocation8 + $0x54] sm:$0xf] }
  0x4a   :  { %v1357_v3 = vor.u32 %v1814_v0, %v1354_v1  ;;  %v1594_v51 = vld [vmem:[#allocation8 + $0x68] sm:$0xf0]  ;;  %v1576_v59 = vld [vmem:[#allocation8 + $0x40] sm:$0xf]  ;;  %v1871_v60 = vld [vmem:[#allocation8 + $0x44] sm:$0xf0] }
  0x4b   :  { %685 = vmatpush.bf16.msra.mxu2 %v1469_v10  ;;  %698 = vmatpush.bf16.msra.mxu3 %v1533_v13  ;;  %v1830_v10 = vld [vmem:[#allocation7 + $0x104] sm:$0xf]  ;;  %v1597_v55 = vor.u32 %v1874_v50, %v1594_v51  ;;  %v1578_v63 = vld [vmem:[#allocation8 + $0x48] sm:$0xf0]  ;;  %v1568_v1 = vld [vmem:[#allocation8 + $0x30] sm:$0xf] }
  0x4c   :  { %v1421_v13 = vor.u32 %v1830_v10, %v1418_v11  ;;  %v1870_v61 = vld [vmem:[#allocation8 + $0x44] sm:$0xf]  ;;  %v1868_v6 = vld [vmem:[#allocation8 + $0x34] sm:$0xf]  ;;  %v1666_v11 = vld [vmem:[#allocation8 + $0xf8] sm:$0xf0] }
  0x4d   :  { %660 = vmatpush.bf16.msra.mxu0 %v1333_v5  ;;  %673 = vmatpush.bf16.msra.mxu1 %v1397_v7  ;;  %v1426_v5 = vld [vmem:[#allocation7 + $0x118] sm:$0xf0]  ;;  %v1581_v0 = vor.u32 %v1870_v61, %v1578_v63  ;;  %v1892_v10 = vld [vmem:[#allocation8 + $0xf4] sm:$0xf]  ;;  %v1867_v14 = vld [vmem:[#allocation8 + $0x24] sm:$0xf0] }
  0x4e   :  { %v1429_v7 = vor.u32 %v1832_v4, %v1426_v5  ;;  %v1893_v5 = vld [vmem:[#allocation8 + $0xf4] sm:$0xf0]  ;;  %v1669_v12 = vor.u32 %v1892_v10, %v1666_v11  ;;  %v1884_v51 = vld [vmem:[#allocation8 + $0xb4] sm:$0xf]  ;;  %v1616_v61 = vld [vmem:[#allocation8 + $0x90] sm:$0xf] }
  0x4f   :  { %686 = vmatpush.bf16.msra.mxu2 %v1461_v23  ;;  %699 = vmatpush.bf16.msra.mxu3 %v1525_v25  ;;  %v1600_v23 = vld [vmem:[#allocation8 + $0x70] sm:$0xf]  ;;  %v1885_v50 = vld [vmem:[#allocation8 + $0xb4] sm:$0xf0]  ;;  %v1880_v63 = vld [vmem:[#allocation8 + $0x94] sm:$0xf] }
  0x50   :  { %v1601_v29 = vor.u32 %v1877_v24, %v1600_v23  ;;  %v1658_v23 = vld [vmem:[#allocation8 + $0xe8] sm:$0xf0]  ;;  %s1267_s5 = sshll.u32 %s2129_s4, 4  ;;  %s1269_s27 = sshll.u32 %s2200_s6, 4  ;;  %s1268_s5 = int_to_ptr.vmem [resolvable:$true] %s1267_s5  ;;  %s1270_s27 = int_to_ptr.hbm [resolvable:$true] %s1269_s27 }
  0x51   :  { %661 = vmatpush.bf16.msra.mxu0 %v1325_v17  ;;  %674 = vmatpush.bf16.msra.mxu1 %v1389_v19  ;;  %v122_v17 = vperm.slane %v115_v16, 0  ;;  %v1610_v10 = vld [vmem:[#allocation8 + $0x88] sm:$0xf0] }
  0x53   :  { %687 = vmatpush.bf16.msra.mxu2 %v1453_v35  ;;  %700 = vmatpush.bf16.msra.mxu3 %v1517_v37 }
  0x55   :  { %662 = vmatpush.bf16.msra.mxu0 %v1317_v28  ;;  %675 = vmatpush.bf16.msra.mxu1 %v1381_v31  ;;  %v125_v28 = vperm.slane %v115_v16, 3 }
  0x57   :  { %688 = vmatpush.bf16.msra.mxu2 %v1445_v47  ;;  %701 = vmatpush.bf16.msra.mxu3 %v1509_v49 }
  0x59   :  { %663 = vmatpush.bf16.msra.mxu0 %v1309_v41  ;;  %676 = vmatpush.bf16.msra.mxu1 %v1373_v43  ;;  %v1602_v41 = vld [vmem:[#allocation8 + $0x78] sm:$0xf0]  ;;  %v1584_v43 = vld [vmem:[#allocation8 + $0x50] sm:$0xf] }
  0x5a   :  { %v1605_v47 = vor.u32 %v1876_v40, %v1602_v41  ;;  %v1585_v52 = vor.u32 %v1873_v44, %v1584_v43  ;;  %v1640_v40 = vld [vmem:[#allocation8 + $0xc0] sm:$0xf]  ;;  %v1887_v41 = vld [vmem:[#allocation8 + $0xc4] sm:$0xf0]  ;;  %v1546_v44 = vld [vmem:[#allocation8 + $0x8] sm:$0xf0] }
  0x5b   :  { %689 = vmatpush.bf16.msra.mxu2 %v1437_v58  ;;  %702 = vmatpush.bf16.msra.mxu3 %v1501_v62  ;;  %v1577_v62 = vor.u32 %v1871_v60, %v1576_v59  ;;  %v1641_v43 = vor.u32 %v1887_v41, %v1640_v40  ;;  %v1626_v59 = vld [vmem:[#allocation8 + $0xa8] sm:$0xf0] }
  0x5d   :  { %664 = vmatpush.bf16.msra.mxu0 %v1301_v53  ;;  %677 = vmatpush.bf16.msra.mxu1 %v1365_v57  ;;  %v1586_v57 = vld [vmem:[#allocation8 + $0x58] sm:$0xf0] }
  0x5e   :  { %v1589_v58 = vor.u32 %v1872_v56, %v1586_v57  ;;  %v1883_v56 = vld [vmem:[#allocation8 + $0xa4] sm:$0xf0]  ;;  %v1882_v57 = vld [vmem:[#allocation8 + $0xa4] sm:$0xf] }
  0x5f   :  { %690 = vmatpush.bf16.msra.mxu2 %v1429_v7  ;;  %703 = vmatpush.bf16.msra.mxu3 %v1493_v9  ;;  %v1570_v7 = vld [vmem:[#allocation8 + $0x38] sm:$0xf0]  ;;  %v1629_v60 = vor.u32 %v1882_v57, %v1626_v59  ;;  %v1905_v59 = vld [vmem:[#allocation10 + $0x54] sm:$0xf0] }
  0x60   :  { %v1573_v9 = vor.u32 %v1868_v6, %v1570_v7  ;;  %v1608_v6 = vld [vmem:[#allocation8 + $0x80] sm:$0xf]  ;;  %v1879_v7 = vld [vmem:[#allocation8 + $0x84] sm:$0xf0] }
  0x61   :  { %665 = vmatpush.bf16.msra.mxu0 %v1293_v2  ;;  %678 = vmatpush.bf16.msra.mxu1 %v1357_v3  ;;  %v1869_v2 = vld [vmem:[#allocation8 + $0x34] sm:$0xf0]  ;;  %v1664_v3 = vld [vmem:[#allocation8 + $0xf0] sm:$0xf] }
  0x62   :  { %v1569_v4 = vor.u32 %v1869_v2, %v1568_v1  ;;  %v1665_v8 = vor.u32 %v1893_v5, %v1664_v3  ;;  %v1618_v1 = vld [vmem:[#allocation8 + $0x98] sm:$0xf0]  ;;  %v116_v3 = vld [vmem:[#allocation11 + $0x4] sm:$0x3] }
  0x63   :  { %691 = vmatpush.bf16.msra.mxu2 %v1421_v13  ;;  %704 = vmatpush.bf16.msra.mxu3 %v1485_v15  ;;  %v1560_v13 = vld [vmem:[#allocation8 + $0x20] sm:$0xf]  ;;  %v1621_v2 = vor.u32 %v1880_v63, %v1618_v1  ;;  %v282_v11 = vperm.slane %v116_v3, 0  ;;  %v1923_v1 = vld [vmem:[#allocation10 + $0xe4] sm:$0xf0] }
  0x64   :  { %v1656_v15 = vld [vmem:[#allocation8 + $0xe0] sm:$0xf]  ;;  %v1561_v16 = vor.u32 %v1867_v14, %v1560_v13  ;;  %v1728_v14 = vld [vmem:[#allocation10 + $0x70] sm:$0xf] }
  0xa1   :  { %v166_v19 = vpop.f32.mrf.mxu0  ;;  %v179_v20 = vpop.f32.mrf.mxu1 }
  0xa2   :  { %v167_v21 = vadd.f32 %v166_v19, %v122_v17  ;;  %v180_v22 = vadd.f32 %v179_v20, %v123_v18  ;;  %v1891_v17 = vld [vmem:[#allocation8 + $0xe4] sm:$0xf0]  ;;  %v1866_v18 = vld [vmem:[#allocation8 + $0x24] sm:$0xf]  ;;  %v1562_v19 = vld [vmem:[#allocation8 + $0x28] sm:$0xf0] }
  0xa3   :  { %v1657_v20 = vor.u32 %v1891_v17, %v1656_v15  ;;  %v1909_v15 = vld [vmem:[#allocation10 + $0x74] sm:$0xf0] }
  0xa4   :  { %v209_v25 = vmax.f32 %v167_v21, 0.0  ;;  %v210_v26 = vmax.f32 %v180_v22, 0.0  ;;  %v1565_v21 = vor.u32 %v1866_v18, %v1562_v19  ;;  %v1890_v22 = vld [vmem:[#allocation8 + $0xe4] sm:$0xf]  ;;  %v1729_v17 = vor.u32 %v1909_v15, %v1728_v14  ;;  %v1730_v18 = vld [vmem:[#allocation10 + $0x78] sm:$0xf0] }
  0xa5   :  { %v1661_v24 = vor.u32 %v1890_v22, %v1658_v23  ;;  %v1720_v19 = vld [vmem:[#allocation10 + $0x60] sm:$0xf]  ;;  %v1920_v14 = vld [vmem:[#allocation10 + $0xd4] sm:$0xf] }
  0xa6   :  { %v213_v30 = vpack.c.bf16 %v209_v25, %v209_v25  ;;  %v214_v31 = vpack.c.bf16 %v210_v26, %v210_v26  ;;  %v1552_v25 = vld [vmem:[#allocation8 + $0x10] sm:$0xf]  ;;  %v1865_v26 = vld [vmem:[#allocation8 + $0x14] sm:$0xf0] }
  0xa8   :  { %614 = vmatmul.bf16.vlgmr.msrb.gmra.mxu0 %v213_v30  ;;  %627 = vmatmul.bf16.vlgmr.msrb.gmra.mxu1 %v214_v31 }
  0xa9   :  { %v192_v34 = vpop.f32.mrf.mxu2  ;;  %v205_v35 = vpop.f32.mrf.mxu3  ;;  %911 = vmatpush.bf16.msrb.mxu0 %v1601_v29  ;;  %924 = vmatpush.bf16.msrb.mxu1 %v1665_v8  ;;  %v1889_v29 = vld [vmem:[#allocation8 + $0xd4] sm:$0xf0]  ;;  %v1878_v8 = vld [vmem:[#allocation8 + $0x84] sm:$0xf] }
  0xaa   :  { %v193_v36 = vadd.f32 %v192_v34, %v124_v27  ;;  %v206_v37 = vadd.f32 %v205_v35, %v125_v28  ;;  %v168_v38 = vpop.f32.mrf.mxu0  ;;  %v181_v39 = vpop.f32.mrf.mxu1  ;;  %v1648_v27 = vld [vmem:[#allocation8 + $0xd0] sm:$0xf]  ;;  %v1553_v28 = vor.u32 %v1865_v26, %v1552_v25  ;;  %v1888_v34 = vld [vmem:[#allocation8 + $0xd4] sm:$0xf]  ;;  %v1650_v35 = vld [vmem:[#allocation8 + $0xd8] sm:$0xf0] }
  0xab   :  { %v1649_v32 = vor.u32 %v1889_v29, %v1648_v27  ;;  %v1863_v38 = vld [vmem:[#allocation8 + $0x4] sm:$0xf0]  ;;  %v1722_v25 = vld [vmem:[#allocation10 + $0x68] sm:$0xf0]  ;;  %v1792_v26 = vld [vmem:[#allocation10 + $0xf0] sm:$0xf] }
  0xac   :  { %v211_v45 = vmax.f32 %v193_v36, 0.0  ;;  %v212_v46 = vmax.f32 %v206_v37, 0.0  ;;  %v1653_v36 = vor.u32 %v1888_v34, %v1650_v35  ;;  %v1544_v37 = vld [vmem:[#allocation8] sm:$0xf]  ;;  %v1924_v29 = vld [vmem:[#allocation10 + $0xf4] sm:$0xf] }
  0xad   :  { %912 = vmatpush.bf16.msrb.mxu0 %v1593_v42  ;;  %925 = vmatpush.bf16.msrb.mxu1 %v1657_v20  ;;  %v1545_v39 = vor.u32 %v1863_v38, %v1544_v37  ;;  %v1862_v42 = vld [vmem:[#allocation8 + $0x4] sm:$0xf]  ;;  %v1907_v20 = vld [vmem:[#allocation10 + $0x64] sm:$0xf0] }
  0xae   :  { %v215_v48 = vpack.c.bf16 %v211_v45, %v211_v45  ;;  %v216_v49 = vpack.c.bf16 %v212_v46, %v212_v46  ;;  %v1886_v45 = vld [vmem:[#allocation8 + $0xc4] sm:$0xf]  ;;  %v1642_v46 = vld [vmem:[#allocation8 + $0xc8] sm:$0xf0]  ;;  %v1721_v27 = vor.u32 %v1907_v20, %v1720_v19  ;;  %v1901_v19 = vld [vmem:[#allocation10 + $0x34] sm:$0xf0] }
  0xaf   :  { %v1900_v20 = vld [vmem:[#allocation10 + $0x34] sm:$0xf] }
  0xb0   :  { %640 = vmatmul.bf16.vlgmr.msrb.gmra.mxu2 %v215_v48  ;;  %653 = vmatmul.bf16.vlgmr.msrb.gmra.mxu3 %v216_v49 }
  0xb1   :  { %v194_v53 = vpop.f32.mrf.mxu2  ;;  %v207_v54 = vpop.f32.mrf.mxu3  ;;  %937 = vmatpush.bf16.msrb.mxu2 %v1605_v47  ;;  %913 = vmatpush.bf16.msrb.mxu0 %v1585_v52  ;;  %v1549_v47 = vor.u32 %v1862_v42, %v1546_v44 }
  0xb2   :  { %950 = vmatpush.bf16.msrb.mxu3 %v1669_v12  ;;  %926 = vmatpush.bf16.msrb.mxu1 %v1649_v32  ;;  %v1634_v53 = vld [vmem:[#allocation8 + $0xb8] sm:$0xf0]  ;;  %v1613_v12 = vor.u32 %v1878_v8, %v1610_v10  ;;  %v1902_v8 = vld [vmem:[#allocation10 + $0x44] sm:$0xf]  ;;  %v1706_v10 = vld [vmem:[#allocation10 + $0x48] sm:$0xf0] }
  0xb3   :  { %v1637_v54 = vor.u32 %v1884_v51, %v1634_v53 }
  0xb5   :  { %938 = vmatpush.bf16.msrb.mxu2 %v1597_v55  ;;  %914 = vmatpush.bf16.msrb.mxu0 %v1577_v62  ;;  %v1624_v55 = vld [vmem:[#allocation8 + $0xa0] sm:$0xf]  ;;  %v1881_v62 = vld [vmem:[#allocation8 + $0x94] sm:$0xf0] }
  0xb6   :  { %951 = vmatpush.bf16.msrb.mxu3 %v1661_v24  ;;  %927 = vmatpush.bf16.msrb.mxu1 %v1641_v43  ;;  %v1906_v24 = vld [vmem:[#allocation10 + $0x64] sm:$0xf]  ;;  %v283_v43 = vperm.slane %v116_v3, 1 }
  0xb7   :  { %v1725_v32 = vor.u32 %v1906_v24, %v1722_v25  ;;  %v1768_v24 = vld [vmem:[#allocation10 + $0xc0] sm:$0xf]  ;;  %v1919_v25 = vld [vmem:[#allocation10 + $0xc4] sm:$0xf0] }
  0xb8   :  { %666 = vmatmul.bf16.vlgmr.msra.gmra.mxu0 %v213_v30  ;;  %679 = vmatmul.bf16.vlgmr.msra.gmra.mxu1 %v214_v31  ;;  %v1864_v30 = vld [vmem:[#allocation8 + $0x14] sm:$0xf]  ;;  %v1554_v31 = vld [vmem:[#allocation8 + $0x18] sm:$0xf0] }
  0xb9   :  { %939 = vmatpush.bf16.msrb.mxu2 %v1589_v58  ;;  %915 = vmatpush.bf16.msrb.mxu0 %v1569_v4  ;;  %v1557_v33 = vor.u32 %v1864_v30, %v1554_v31  ;;  %v1625_v58 = vor.u32 %v1883_v56, %v1624_v55  ;;  %v1794_v30 = vld [vmem:[#allocation10 + $0xf8] sm:$0xf0] }
  0xba   :  { %952 = vmatpush.bf16.msrb.mxu3 %v1653_v36  ;;  %v1797_v34 = vor.u32 %v1924_v29, %v1794_v30  ;;  %v1688_v29 = vld [vmem:[#allocation10 + $0x20] sm:$0xf]  ;;  %v1899_v30 = vld [vmem:[#allocation10 + $0x24] sm:$0xf0] }
  0xbd   :  { %940 = vmatpush.bf16.msrb.mxu2 %v1581_v0  ;;  %916 = vmatpush.bf16.msrb.mxu0 %v1561_v16  ;;  %v1617_v0 = vor.u32 %v1881_v62, %v1616_v61  ;;  %v1908_v16 = vld [vmem:[#allocation10 + $0x74] sm:$0xf]  ;;  %v1714_v62 = vld [vmem:[#allocation10 + $0x58] sm:$0xf0] }
  0xbe   :  { %v1733_v23 = vor.u32 %v1908_v16, %v1730_v18  ;;  %v1778_v16 = vld [vmem:[#allocation10 + $0xd8] sm:$0xf0]  ;;  %v1696_v18 = vld [vmem:[#allocation10 + $0x30] sm:$0xf] }
  0xc0   :  { %692 = vmatmul.bf16.vlgmr.msra.gmra.mxu2 %v215_v48  ;;  %705 = vmatmul.bf16.vlgmr.msra.gmra.mxu3 %v216_v49  ;;  %v1645_v48 = vor.u32 %v1886_v45, %v1642_v46  ;;  %v1632_v49 = vld [vmem:[#allocation8 + $0xb0] sm:$0xf] }
  0xc1   :  { %941 = vmatpush.bf16.msrb.mxu2 %v1573_v9  ;;  %917 = vmatpush.bf16.msrb.mxu0 %v1553_v28  ;;  %v1633_v52 = vor.u32 %v1885_v50, %v1632_v49  ;;  %v1609_v9 = vor.u32 %v1879_v7, %v1608_v6  ;;  %v1925_v28 = vld [vmem:[#allocation10 + $0xf4] sm:$0xf0]  ;;  %v1704_v6 = vld [vmem:[#allocation10 + $0x40] sm:$0xf]  ;;  %v1903_v7 = vld [vmem:[#allocation10 + $0x44] sm:$0xf0] }
  0xc2   :  { %953 = vmatpush.bf16.msrb.mxu3 %v1645_v48 }
  0xc3   :  { %928 = vmatpush.bf16.msrb.mxu1 %v1633_v52 }
  0xc5   :  { %942 = vmatpush.bf16.msrb.mxu2 %v1565_v21  ;;  %918 = vmatpush.bf16.msrb.mxu0 %v1545_v39 }
  0xc6   :  { %954 = vmatpush.bf16.msrb.mxu3 %v1637_v54 }
  0xc7   :  { %929 = vmatpush.bf16.msrb.mxu1 %v1625_v58  ;;  %v1712_v58 = vld [vmem:[#allocation10 + $0x50] sm:$0xf] }
  0xc8   :  { %v1713_v61 = vor.u32 %v1905_v59, %v1712_v58  ;;  %v1674_v58 = vld [vmem:[#allocation10 + $0x8] sm:$0xf0] }
  0xc9   :  { %943 = vmatpush.bf16.msrb.mxu2 %v1557_v33  ;;  %1164 = vmatpush.bf16.msra.mxu0 %v1729_v17  ;;  %v1793_v33 = vor.u32 %v1925_v28, %v1792_v26  ;;  %v1781_v17 = vor.u32 %v1920_v14, %v1778_v16  ;;  %v1918_v26 = vld [vmem:[#allocation10 + $0xc4] sm:$0xf]  ;;  %v1770_v28 = vld [vmem:[#allocation10 + $0xc8] sm:$0xf0] }
  0xca   :  { %955 = vmatpush.bf16.msrb.mxu3 %v1629_v60  ;;  %v1904_v60 = vld [vmem:[#allocation10 + $0x54] sm:$0xf] }
  0xcb   :  { %930 = vmatpush.bf16.msrb.mxu1 %v1617_v0  ;;  %v1717_v63 = vor.u32 %v1904_v60, %v1714_v62  ;;  %v1784_v0 = vld [vmem:[#allocation10 + $0xe0] sm:$0xf]  ;;  %v1744_v60 = vld [vmem:[#allocation10 + $0x90] sm:$0xf]  ;;  %v1912_v62 = vld [vmem:[#allocation10 + $0x94] sm:$0xf] }
  0xcc   :  { %v1785_v3 = vor.u32 %v1923_v1, %v1784_v0  ;;  %v1746_v0 = vld [vmem:[#allocation10 + $0x98] sm:$0xf0] }
  0xcd   :  { %944 = vmatpush.bf16.msrb.mxu2 %v1549_v47  ;;  %1165 = vmatpush.bf16.msra.mxu0 %v1721_v27  ;;  %v1769_v27 = vor.u32 %v1919_v25, %v1768_v24  ;;  %v1749_v1 = vor.u32 %v1912_v62, %v1746_v0 }
  0xce   :  { %956 = vmatpush.bf16.msrb.mxu3 %v1621_v2  ;;  %v1922_v2 = vld [vmem:[#allocation10 + $0xe4] sm:$0xf] }
  0xcf   :  { %931 = vmatpush.bf16.msrb.mxu1 %v1609_v9  ;;  %v1705_v9 = vor.u32 %v1903_v7, %v1704_v6  ;;  %v1738_v6 = vld [vmem:[#allocation10 + $0x88] sm:$0xf0] }
  0xd1   :  { %1190 = vmatpush.bf16.msra.mxu2 %v1733_v23  ;;  %1166 = vmatpush.bf16.msra.mxu0 %v1713_v61  ;;  %v1913_v61 = vld [vmem:[#allocation10 + $0x94] sm:$0xf0] }
  0xd2   :  { %957 = vmatpush.bf16.msrb.mxu3 %v1613_v12  ;;  %v1776_v12 = vld [vmem:[#allocation10 + $0xd0] sm:$0xf] }
  0xd3   :  { %1177 = vmatpush.bf16.msra.mxu1 %v1793_v33  ;;  %v1898_v33 = vld [vmem:[#allocation10 + $0x24] sm:$0xf] }
  0xd5   :  { %1191 = vmatpush.bf16.msra.mxu2 %v1725_v32  ;;  %1167 = vmatpush.bf16.msra.mxu0 %v1705_v9  ;;  %v1689_v32 = vor.u32 %v1899_v30, %v1688_v29 }
  0xd6   :  { %1203 = vmatpush.bf16.msra.mxu3 %v1797_v34  ;;  %v1690_v34 = vld [vmem:[#allocation10 + $0x28] sm:$0xf0] }
  0xd7   :  { %1178 = vmatpush.bf16.msra.mxu1 %v1785_v3  ;;  %v1911_v3 = vld [vmem:[#allocation10 + $0x84] sm:$0xf0] }
  0xd9   :  { %1192 = vmatpush.bf16.msra.mxu2 %v1717_v63  ;;  %v1745_v63 = vor.u32 %v1913_v61, %v1744_v60 }
 0x125   :  { %v615_v4 = vpop.f32.mrf.mxu0  ;;  %v628_v5 = vpop.f32.mrf.mxu1 }
 0x126   :  { %v616_v13 = vadd.f32 %v615_v4, %v282_v11  ;;  %v1786_v4 = vld [vmem:[#allocation10 + $0xe8] sm:$0xf0]  ;;  %v1709_v11 = vor.u32 %v1902_v8, %v1706_v10  ;;  %v117_v10 = vld [vmem:[#allocation11 + $0x6] sm:$0x3] }
 0x127   :  { %v748_v16 = vperm.slane %v117_v10, 1 }
 0x128   :  { %v629_v31 = vadd.f32 %v628_v5, %v616_v13  ;;  %v1789_v5 = vor.u32 %v1922_v2, %v1786_v4  ;;  %v1921_v13 = vld [vmem:[#allocation10 + $0xd4] sm:$0xf0]  ;;  %1193 = vmatpush.bf16.msra.mxu2 %v1709_v11  ;;  %v1736_v2 = vld [vmem:[#allocation10 + $0x80] sm:$0xf]  ;;  %v1910_v4 = vld [vmem:[#allocation10 + $0x84] sm:$0xf] }
 0x129   :  { %v1777_v15 = vor.u32 %v1921_v13, %v1776_v12  ;;  %v1741_v7 = vor.u32 %v1910_v4, %v1738_v6  ;;  %v747_v12 = vperm.slane %v117_v10, 0 }
 0x12a   :  { %1204 = vmatpush.bf16.msra.mxu3 %v1789_v5  ;;  %v1737_v5 = vor.u32 %v1911_v3, %v1736_v2 }
 0x12b   :  { %1179 = vmatpush.bf16.msra.mxu1 %v1777_v15 }
 0x12d   :  { %v617_v21 = vpop.f32.mrf.mxu0  ;;  %v630_v22 = vpop.f32.mrf.mxu1 }
 0x12e   :  { %v1697_v21 = vor.u32 %v1901_v19, %v1696_v18  ;;  %v1698_v22 = vld [vmem:[#allocation10 + $0x38] sm:$0xf0]  ;;  %1205 = vmatpush.bf16.msra.mxu3 %v1781_v17 }
 0x12f   :  { %v1701_v23 = vor.u32 %v1900_v20, %v1698_v22  ;;  %1180 = vmatpush.bf16.msra.mxu1 %v1769_v27  ;;  %v118_v27 = vld [vmem:[#allocation11 + $0x8] sm:$0x3] }
 0x130   :  { %1168 = vmatpush.bf16.msra.mxu0 %v1697_v21  ;;  %v1000_v29 = vperm.slane %v118_v27, 0 }
 0x131   :  { %1194 = vmatpush.bf16.msra.mxu2 %v1701_v23 }
 0x133   :  { %v641_v35 = vpop.f32.mrf.mxu2  ;;  %v654_v36 = vpop.f32.mrf.mxu3 }
 0x134   :  { %v642_v37 = vadd.f32 %v641_v35, %v629_v31  ;;  %v1773_v31 = vor.u32 %v1918_v26, %v1770_v28  ;;  %v1693_v35 = vor.u32 %v1898_v33, %v1690_v34  ;;  %1169 = vmatpush.bf16.msra.mxu0 %v1689_v32 }
 0x135   :  { %v667_v39 = vpop.f32.mrf.mxu0  ;;  %v680_v40 = vpop.f32.mrf.mxu1 }
 0x136   :  { %v655_v38 = vadd.f32 %v654_v36, %v642_v37  ;;  %v668_v46 = vadd.f32 %v667_v39, %v283_v43  ;;  %1206 = vmatpush.bf16.msra.mxu3 %v1773_v31  ;;  %v1760_v36 = vld [vmem:[#allocation10 + $0xb0] sm:$0xf]  ;;  %v1917_v37 = vld [vmem:[#allocation10 + $0xb4] sm:$0xf0]  ;;  %1195 = vmatpush.bf16.msra.mxu2 %v1693_v35  ;;  %v1001_v35 = vperm.slane %v118_v27, 1 }
 0x137   :  { %v1761_v39 = vor.u32 %v1917_v37, %v1760_v36  ;;  %v1897_v43 = vld [vmem:[#allocation10 + $0x14] sm:$0xf0] }
 0x138   :  { %v710_v41 = vmax.f32 %v655_v38, 0.0  ;;  %v681_v49 = vadd.f32 %v680_v40, %v668_v46  ;;  %v1916_v38 = vld [vmem:[#allocation10 + $0xb4] sm:$0xf]  ;;  %v1762_v40 = vld [vmem:[#allocation10 + $0xb8] sm:$0xf0] }
 0x139   :  { %1181 = vmatpush.bf16.msra.mxu1 %v1761_v39  ;;  %v1682_v46 = vld [vmem:[#allocation10 + $0x18] sm:$0xf0] }
 0x13a   :  { %v712_v42 = vpack.c.bf16 %v710_v41, %v710_v41  ;;  %v1765_v41 = vor.u32 %v1916_v38, %v1762_v40 }
 0x13b   :  { %v643_v44 = vpop.f32.mrf.mxu2  ;;  %v656_v45 = vpop.f32.mrf.mxu3 }
 0x13c   :  { %919 = vmatmul.bf16.vlgmr.msrb.gmra.mxu0 %v712_v42  ;;  %945 = vmatmul.bf16.vlgmr.msrb.gmra.mxu2 %v712_v42  ;;  %v1680_v42 = vld [vmem:[#allocation10 + $0x10] sm:$0xf]  ;;  %v1896_v44 = vld [vmem:[#allocation10 + $0x14] sm:$0xf] }
 0x13d   :  { %v669_v47 = vpop.f32.mrf.mxu0  ;;  %v682_v48 = vpop.f32.mrf.mxu1  ;;  %v1681_v45 = vor.u32 %v1897_v43, %v1680_v42  ;;  %1207 = vmatpush.bf16.msra.mxu3 %v1765_v41 }
 0x13e   :  { %v1685_v47 = vor.u32 %v1896_v44, %v1682_v46  ;;  %v1752_v48 = vld [vmem:[#allocation10 + $0xa0] sm:$0xf] }
 0x13f   :  { %1170 = vmatpush.bf16.msra.mxu0 %v1681_v45 }
 0x140   :  { %1196 = vmatpush.bf16.msra.mxu2 %v1685_v47 }
 0x143   :  { %v693_v50 = vpop.f32.mrf.mxu2  ;;  %v706_v51 = vpop.f32.mrf.mxu3 }
 0x144   :  { %v694_v52 = vadd.f32 %v693_v50, %v681_v49  ;;  %v1915_v49 = vld [vmem:[#allocation10 + $0xa4] sm:$0xf0]  ;;  %v1914_v50 = vld [vmem:[#allocation10 + $0xa4] sm:$0xf] }
 0x146   :  { %v707_v53 = vadd.f32 %v706_v51, %v694_v52  ;;  %v1753_v51 = vor.u32 %v1915_v49, %v1752_v48  ;;  %v1754_v52 = vld [vmem:[#allocation10 + $0xa8] sm:$0xf0] }
 0x148   :  { %v711_v54 = vmax.f32 %v707_v53, 0.0  ;;  %v1757_v53 = vor.u32 %v1914_v50, %v1754_v52  ;;  %1182 = vmatpush.bf16.msra.mxu1 %v1753_v51 }
 0x14a   :  { %v713_v55 = vpack.c.bf16 %v711_v54, %v711_v54  ;;  %v1672_v54 = vld [vmem:[#allocation10] sm:$0xf]  ;;  %1208 = vmatpush.bf16.msra.mxu3 %v1757_v53 }
 0x14b   :  { %v695_v56 = vpop.f32.mrf.mxu2  ;;  %v708_v57 = vpop.f32.mrf.mxu3 }
 0x14c   :  { %932 = vmatmul.bf16.vlgmr.msrb.gmra.mxu1 %v713_v55  ;;  %958 = vmatmul.bf16.vlgmr.msrb.gmra.mxu3 %v713_v55  ;;  %v1895_v55 = vld [vmem:[#allocation10 + $0x4] sm:$0xf0]  ;;  %v1894_v56 = vld [vmem:[#allocation10 + $0x4] sm:$0xf] }
 0x14d   :  { %v1673_v57 = vor.u32 %v1895_v55, %v1672_v54  ;;  %v1677_v59 = vor.u32 %v1894_v56, %v1674_v58  ;;  %1183 = vmatpush.bf16.msra.mxu1 %v1745_v63 }
 0x14e   :  { %1209 = vmatpush.bf16.msra.mxu3 %v1749_v1 }
 0x14f   :  { %1171 = vmatpush.bf16.msra.mxu0 %v1673_v57  ;;  %1197 = vmatpush.bf16.msra.mxu2 %v1677_v59 }
 0x151   :  { %1184 = vmatpush.bf16.msra.mxu1 %v1737_v5 }
 0x152   :  { %1210 = vmatpush.bf16.msra.mxu3 %v1741_v7 }
 0x1b9   :  { %v920_v8 = vpop.f32.mrf.mxu0 }
 0x1ba   :  { %v921_v14 = vadd.f32 %v920_v8, %v747_v12 }
 0x1bf   :  { %v946_v9 = vpop.f32.mrf.mxu2 }
 0x1c0   :  { %v947_v19 = vadd.f32 %v946_v9, %v748_v16 }
 0x1c1   :  { %v922_v11 = vpop.f32.mrf.mxu0 }
 0x1c7   :  { %v948_v13 = vpop.f32.mrf.mxu2 }
 0x1c9   :  { %v933_v15 = vpop.f32.mrf.mxu1 }
 0x1ca   :  { %v934_v17 = vadd.f32 %v933_v15, %v921_v14 }
 0x1cc   :  { %v963_v18 = vmax.f32 %v934_v17, 0.0 }
 0x1ce   :  { %v965_v20 = vpack.c.bf16 %v963_v18, %v963_v18 }
 0x1cf   :  { %v959_v21 = vpop.f32.mrf.mxu3 }
 0x1d0   :  { %v960_v22 = vadd.f32 %v959_v21, %v947_v19  ;;  %1172 = vmatmul.bf16.vlgmr.msra.gmra.mxu0 %v965_v20  ;;  %1198 = vmatmul.bf16.vlgmr.msra.gmra.mxu2 %v965_v20 }
 0x1d1   :  { %v935_v23 = vpop.f32.mrf.mxu1 }
 0x1d2   :  { %v964_v24 = vmax.f32 %v960_v22, 0.0 }
 0x1d4   :  { %v966_v25 = vpack.c.bf16 %v964_v24, %v964_v24 }
 0x1d6   :  { %1185 = vmatmul.bf16.vlgmr.msra.gmra.mxu1 %v966_v25  ;;  %1211 = vmatmul.bf16.vlgmr.msra.gmra.mxu3 %v966_v25 }
 0x1d7   :  { %v961_v26 = vpop.f32.mrf.mxu3 }
 0x24d   :  { %v1173_v28 = vpop.f32.mrf.mxu0 }
 0x24e   :  { %v1174_v30 = vadd.f32 %v1173_v28, %v1000_v29 }
 0x253   :  { %v1186_v31 = vpop.f32.mrf.mxu1  ;;  %v1199_v32 = vpop.f32.mrf.mxu2 }
 0x254   :  { %v1187_v33 = vadd.f32 %v1186_v31, %v1174_v30  ;;  %v1200_v37 = vadd.f32 %v1199_v32, %v1001_v35 }
 0x255   :  { %v1175_v34 = vpop.f32.mrf.mxu0 }
 0x256   :  { %1216 = vmax.xlane.f32.xlu0 %v1187_v33 }
 0x259   :  { %v1212_v36 = vpop.f32.mrf.mxu3 }
 0x25a   :  { %v1213_v40 = vadd.f32 %v1212_v36, %v1200_v37 }
 0x25b   :  { %v1188_v38 = vpop.f32.mrf.mxu1  ;;  %v1201_v39 = vpop.f32.mrf.mxu2 }
 0x25e   :  { %1239 = vmax.xlane.f32.xlu0 %v1213_v40 }
 0x261   :  { %v1214_v41 = vpop.f32.mrf.mxu3 }
 0x2c9   :  { %v1217_v42 = vpop.xlane.xlu0 %1216 }
 0x2ca   :  { %v1218_v43 = vsub.f32 %v1187_v33, %v1217_v42 }
 0x2cc   :  { %v1219_v44 = vmul.f32 1.442695, %v1218_v43 }
 0x2ce   :  { %1935 = vpow2.f32 %v1219_v44 }
 0x2d1   :  { %v1240_v45 = vpop.xlane.xlu0 %1239 }
 0x2d2   :  { %v1241_v46 = vsub.f32 %v1213_v40, %v1240_v45 }
 0x2d4   :  { %v1936_v47 = vpop.eup %1935  ;;  %v1242_v48 = vmul.f32 1.442695, %v1241_v46 }
 0x2d5   :  { %1221 = vadd.xlane.f32.xlu1 %v1936_v47 }
 0x2d6   :  { %1937 = vpow2.f32 %v1242_v48 }
 0x2dc   :  { %v1938_v49 = vpop.eup %1937 }
 0x2dd   :  { %1244 = vadd.xlane.f32.xlu1 %v1938_v49 }
 0x348   :  { %v1222_v50 = vpop.xlane.xlu1 %1221 }
 0x349   :  { %1939 = vrcp.f32 %v1222_v50  ;;  %v1234_v55 = vand.u32 2147483648, %v1222_v50  ;;  %v1232_v57 = vand.u32 2147483647, %v1222_v50  ;;  %vm1228_vm3 = vweird.f32 %v1222_v50 }
 0x34b   :  { %v1235_v60 = vor.u32 1.1754944e-38, %v1234_v55  ;;  %vm1233_vm5 = vcmp.eq.f32.partialorder %v1232_v57, 8.507059e+37 }
 0x34f   :  { %v1940_v51 = vpop.eup %1939 }
 0x350   :  { %v1224_v52 = vmul.f32 %v1940_v51, %v1222_v50  ;;  %v1245_v53 = vpop.xlane.xlu1 %1244  ;;  %vm1229_vm2 = vweird.f32 %v1940_v51 }
 0x351   :  { %1941 = vrcp.f32 %v1245_v53  ;;  %vm1230_vm4 = vmor %vm1228_vm3, %vm1229_vm2  ;;  %v1257_v2 = vand.u32 2147483648, %v1245_v53  ;;  %v1255_v4 = vand.u32 2147483647, %v1245_v53  ;;  %vm1251_vm7 = vweird.f32 %v1245_v53 }
 0x352   :  { %v1225_v54 = vsub.f32 1.0, %v1224_v52 }
 0x353   :  { %v1258_v6 = vor.u32 1.1754944e-38, %v1257_v2  ;;  %vm1256_vm9 = vcmp.eq.f32.partialorder %v1255_v4, 8.507059e+37 }
 0x354   :  { %v1226_v56 = vmul.f32 %v1940_v51, %v1225_v54 }
 0x356   :  { %v1227_v58 = vadd.f32 %v1940_v51, %v1226_v56 }
 0x357   :  { %v1942_v59 = vpop.eup %1941 }
 0x358   :  { %v1247_v61 = vmul.f32 %v1942_v59, %v1245_v53  ;;  %v1231_v62 = vsel %vm1230_vm4, %v1940_v51, %v1227_v58  ;;  %vm1252_vm6 = vweird.f32 %v1942_v59 }
 0x359   :  { %v1236_v63 = vsel %vm1233_vm5, %v1235_v60, %v1231_v62  ;;  %vm1253_vm8 = vmor %vm1251_vm7, %vm1252_vm6 }
 0x35a   :  { %v1248_v0 = vsub.f32 1.0, %v1247_v61  ;;  %v1237_v1 = vmul.f32 %v1936_v47, %v1236_v63 }
 0x35c   :  { %v1249_v3 = vmul.f32 %v1942_v59, %v1248_v0  ;;  %1238 = vst [vmem:[#allocation13] sm:$0xff] %v1237_v1 }
 0x35e   :  { %v1250_v5 = vadd.f32 %v1942_v59, %v1249_v3 }
 0x360   :  { %v1254_v7 = vsel %vm1253_vm8, %v1942_v59, %v1250_v5 }
 0x361   :  { %v1259_v8 = vsel %vm1256_vm9, %v1258_v6, %v1254_v7 }
 0x362   :  { %v1260_v9 = vmul.f32 %v1938_v49, %v1259_v8 }
 0x364   :  { %1261 = vst [vmem:[#allocation13 + $0x8] sm:$0xff] %v1260_v9 }
 0x365   :  { %1272 = dma.vmem_to_hbm [thread:$0]  %s1268_s5, 256, %s1270_s27, [#allocation4]  }
 0x366   :  { %2119 = dma.done.wait [#allocation4], 256  }
 0x367   :  { %2120 = vsyncadd [#allocation4], 4294967040 }
 0x368   :  { %1277 = vsyncpa [#allocation3], 1 }
 0x369   :  { %1278 = vsyncpa [#allocation6], 1 }
 0x36a   :  { %1279 = vsyncpa [#allocation9], 1 }
 0x36b   :  { %1280 = vsyncpa [#allocation12], 1 }
 0x36c   :  { %1281 = vsyncpa [#allocation4], 1 }

// kernel: tpu_custom_call.1
= control target key start
LH: loop header
LB: loop body
LE: loop exit
PB: predicated region body
PF: predicated region fallthrough
CT: control target
= control target key end

     0   :  { %11 = vsyncpa [#allocation3], 0  ;;  %s2194_s0 = inlined_call_operand.hbm [shape: f32[8,8], index: 0, kind: input, shape index: {}]   ;;  %s2195_s1 = inlined_call_operand.hbm [shape: bf16[8,512], index: 1, kind: input, shape index: {}]   ;;  %s2196_s2 = inlined_call_operand.hbm [shape: bf16[512,256], index: 2, kind: input, shape index: {}]   ;;  %s2197_s3 = inlined_call_operand.hbm [shape: bf16[256,256], index: 3, kind: input, shape index: {}]   ;;  %s2198_s4 = inlined_call_operand.hbm [shape: bf16[256,256], index: 4, kind: input, shape index: {}]   ;;  %s2199_s5 = inlined_call_operand.hbm [shape: f32[1,1280], index: 5, kind: input, shape index: {}]   ;;  %s2200_s6 = inlined_call_operand.hbm [shape: f32[8,256], index: 6, kind: output, shape index: {}]  }
   0x1   :  { %12 = vsyncpa [#allocation6], 0 }
   0x2   :  { %13 = vsyncpa [#allocation9], 0 }
   0x3   :  { %14 = vsyncpa [#allocation12], 0  ;;  %s32_s23 = sshll.u32 %s2195_s1, 4  ;;  %s33_s23 = int_to_ptr.hbm [resolvable:$true] %s32_s23 }
   0x4   :  { %15 = vsyncpa [#allocation4], 0  ;;  %s2121_s24 = smov [#allocation5]   ;;  %s55_s28 = sshll.u32 %s2197_s3, 4  ;;  %s56_s28 = int_to_ptr.hbm [resolvable:$true] %s55_s28 }
   0x5   :  { %s34_s25 = sshll.u32 %s2121_s24, 4  ;;  %s2122_s29 = smov [#allocation8]   ;;  %s35_s25 = int_to_ptr.vmem [resolvable:$true] %s34_s25 }
   0x6   :  { %37 = dma.hbm_to_vmem [thread:$0]  %s33_s23, 256, %s35_s25, [#allocation6]  }
   0x7   :  { %s57_s30 = sshll.u32 %s2122_s29, 4  ;;  %s21_s9 = sshll.u32 %s2194_s0, 4  ;;  %s58_s30 = int_to_ptr.vmem [resolvable:$true] %s57_s30  ;;  %s22_s9 = int_to_ptr.hbm [resolvable:$true] %s21_s9 }
   0x8   :  { %s2123_s1 = smov 128   ;;  %s2124_s10 = smov 8  }
   0x9   :  { %63 = dma.hbm_to_vmem [thread:$0]  %s56_s28, 4096, %s58_s30, [#allocation9], %s2123_s1, %s2123_s1, %s2124_s10  }
   0xa   :  { %s42_s13 = sshll.u32 %s2196_s2, 4  ;;  %s2125_s14 = smov [#allocation2]   ;;  %s43_s13 = int_to_ptr.hbm [resolvable:$true] %s42_s13 }
   0xb   :  { %s23_s15 = sshll.u32 %s2125_s14, 4  ;;  %s2126_s3 = smov [#allocation7]   ;;  %s24_s15 = int_to_ptr.vmem [resolvable:$true] %s23_s15 }
   0xc   :  { %26 = dma.hbm_to_vmem [thread:$0]  %s22_s9, 128, %s24_s15, [#allocation3]  }
   0xd   :  { %s44_s16 = sshll.u32 %s2126_s3, 4  ;;  %s68_s0 = sshll.u32 %s2198_s4, 4  ;;  %s45_s16 = int_to_ptr.vmem [resolvable:$true] %s44_s16  ;;  %s69_s0 = int_to_ptr.hbm [resolvable:$true] %s68_s0 }
   0xe   :  { %50 = dma.hbm_to_vmem [thread:$0]  %s43_s13, 8192, %s45_s16, [#allocation6], %s2123_s1, %s2123_s1, %s2124_s10  }
   0xf   :  { %s82_s21 = sshll.u32 %s2199_s5, 4  ;;  %s2127_s22 = smov [#allocation10]   ;;  %s83_s21 = int_to_ptr.hbm [resolvable:$true] %s82_s21 }
  0x10   :  { %s70_s2 = sshll.u32 %s2127_s22, 4  ;;  %s2128_s23 = smov [#allocation11]   ;;  %s71_s2 = int_to_ptr.vmem [resolvable:$true] %s70_s2 }
  0x11   :  { %76 = dma.hbm_to_vmem [thread:$0]  %s69_s0, 4096, %s71_s2, [#allocation9], %s2123_s1, %s2123_s1, %s2124_s10  }
  0x12   :  { %s84_s24 = sshll.u32 %s2128_s23, 4  ;;  %s85_s24 = int_to_ptr.vmem [resolvable:$true] %s84_s24 }
  0x13   :  { %87 = dma.hbm_to_vmem [thread:$0]  %s83_s21, 160, %s85_s24, [#allocation12]  }
  0x14   :  { %2111 = dma.done.wait [#allocation3], 128  }
  0x15   :  { %2112 = vsyncadd [#allocation3], 4294967168 }
  0x16   :  { %2113 = dma.done.wait [#allocation6], 8448  }
  0x17   :  { %2114 = vsyncadd [#allocation6], 4294958848 }
  0x18   :  { %2115 = dma.done.wait [#allocation9], 8192  }
  0x19   :  { %2116 = vsyncadd [#allocation9], 4294959104 }
  0x1a   :  { %2117 = dma.done.wait [#allocation12], 160  }
  0x1b   :  { %2118 = vsyncadd [#allocation12], 4294967136  ;;  %v119_v0 = vld [vmem:[#allocation5] sm:$0xff]  ;;  %v120_v1 = vld [vmem:[#allocation5 + $0x8] sm:$0xff]  ;;  %vm144_vm0 = vcmask 1043456   ;;  %vm140_vm1 = vcmask 64512  }
  0x1c   :  { %v113_v2 = vld [vmem:[#allocation2] sm:$0xff]  ;;  %v132_v3 = vunpack.c.l.b16 %v119_v0  ;;  %v133_v4 = vunpack.c.h.b16 %v119_v0  ;;  %v134_v5 = vunpack.c.l.b16 %v120_v1  ;;  %v135_v6 = vunpack.c.h.b16 %v120_v1  ;;  %v1344_v7 = vld [vmem:[#allocation7 + $0x70] sm:$0xf]  ;;  %v1813_v8 = vld [vmem:[#allocation7 + $0x74] sm:$0xf0]  ;;  %s2129_s4 = smov [#allocation13]  }
  0x1d   :  { %v1408_v9 = vld [vmem:[#allocation7 + $0xf0] sm:$0xf]  ;;  %v1829_v10 = vld [vmem:[#allocation7 + $0xf4] sm:$0xf0]  ;;  %v1336_v15 = vld [vmem:[#allocation7 + $0x60] sm:$0xf]  ;;  %v114_v19 = vpack.c.bf16 %v113_v2, %v113_v2  ;;  %v1345_v20 = vor.u32 %v1813_v8, %v1344_v7 }
  0x1e   :  { %v136_v11 = vpack.c.b16 %v132_v3, %v132_v3  ;;  %v137_v12 = vpack.c.b16 %v133_v4, %v133_v4  ;;  %v138_v13 = vpack.c.b16 %v134_v5, %v134_v5  ;;  %v139_v14 = vpack.c.b16 %v135_v6, %v135_v6  ;;  %v1811_v16 = vld [vmem:[#allocation7 + $0x64] sm:$0xf0]  ;;  %v1400_v17 = vld [vmem:[#allocation7 + $0xe0] sm:$0xf]  ;;  %v1472_v18 = vld [vmem:[#allocation7 + $0x170] sm:$0xf] }
  0x1f   :  { %v1409_v21 = vor.u32 %v1829_v10, %v1408_v9  ;;  %v1845_v22 = vld [vmem:[#allocation7 + $0x174] sm:$0xf0]  ;;  %v1536_v23 = vld [vmem:[#allocation7 + $0x1f0] sm:$0xf]  ;;  %v1827_v29 = vld [vmem:[#allocation7 + $0xe4] sm:$0xf0]  ;;  %v1337_v34 = vor.u32 %v1811_v16, %v1336_v15 }
  0x20   :  { %v1861_v24 = vld [vmem:[#allocation7 + $0x1f4] sm:$0xf0]  ;;  %v146_v25 = vsel %vm144_vm0, %v136_v11, 0  ;;  %v149_v26 = vsel %vm144_vm0, %v137_v12, 0  ;;  %v152_v27 = vsel %vm144_vm0, %v138_v13, 0  ;;  %v155_v28 = vsel %vm144_vm0, %v139_v14, 0 }
  0x21   :  { %164 = vmatpush.bf16.msra.mxu0 %v146_v25  ;;  %177 = vmatpush.bf16.msra.mxu1 %v149_v26  ;;  %v1473_v30 = vor.u32 %v1845_v22, %v1472_v18  ;;  %v1537_v31 = vor.u32 %v1861_v24, %v1536_v23  ;;  %v1328_v32 = vld [vmem:[#allocation7 + $0x50] sm:$0xf]  ;;  %v1464_v33 = vld [vmem:[#allocation7 + $0x160] sm:$0xf]  ;;  %v1401_v35 = vor.u32 %v1827_v29, %v1400_v17  ;;  %v1843_v36 = vld [vmem:[#allocation7 + $0x164] sm:$0xf0] }
  0x22   :  { %190 = vmatpush.bf16.msra.mxu2 %v152_v27  ;;  %203 = vmatpush.bf16.msra.mxu3 %v155_v28  ;;  %v1528_v37 = vld [vmem:[#allocation7 + $0x1e0] sm:$0xf]  ;;  %v1859_v38 = vld [vmem:[#allocation7 + $0x1e4] sm:$0xf0]  ;;  %v1809_v39 = vld [vmem:[#allocation7 + $0x54] sm:$0xf0]  ;;  %v1465_v42 = vor.u32 %v1843_v36, %v1464_v33 }
  0x23   :  { %v1392_v40 = vld [vmem:[#allocation7 + $0xd0] sm:$0xf]  ;;  %v1825_v41 = vld [vmem:[#allocation7 + $0xd4] sm:$0xf0]  ;;  %v1529_v43 = vor.u32 %v1859_v38, %v1528_v37  ;;  %v1320_v44 = vld [vmem:[#allocation7 + $0x40] sm:$0xf]  ;;  %v1329_v46 = vor.u32 %v1809_v39, %v1328_v32 }
  0x24   :  { %1282 = vmatmul.msk.bf16.vlgmr.msra.gmra.mxu0 %vm140_vm1, %v114_v19  ;;  %1283 = vmatmul.msk.bf16.vlgmr.msra.gmra.mxu1 %vm140_vm1, %v114_v19  ;;  %v1456_v45 = vld [vmem:[#allocation7 + $0x150] sm:$0xf]  ;;  %v1393_v47 = vor.u32 %v1825_v41, %v1392_v40  ;;  %v1841_v48 = vld [vmem:[#allocation7 + $0x154] sm:$0xf0]  ;;  %v1807_v51 = vld [vmem:[#allocation7 + $0x44] sm:$0xf0] }
  0x25   :  { %606 = vmatpush.bf16.msrb.mxu0 %v1345_v20  ;;  %619 = vmatpush.bf16.msrb.mxu1 %v1409_v21  ;;  %v1520_v49 = vld [vmem:[#allocation7 + $0x1d0] sm:$0xf]  ;;  %v1857_v50 = vld [vmem:[#allocation7 + $0x1d4] sm:$0xf0]  ;;  %v1384_v52 = vld [vmem:[#allocation7 + $0xc0] sm:$0xf]  ;;  %v1457_v54 = vor.u32 %v1841_v48, %v1456_v45  ;;  %v1321_v58 = vor.u32 %v1807_v51, %v1320_v44 }
  0x26   :  { %1284 = vmatmul.msk.bf16.vlgmr.msra.gmra.mxu2 %vm140_vm1, %v114_v19  ;;  %1285 = vmatmul.msk.bf16.vlgmr.msra.gmra.mxu3 %vm140_vm1, %v114_v19  ;;  %v1823_v53 = vld [vmem:[#allocation7 + $0xc4] sm:$0xf0]  ;;  %v1521_v55 = vor.u32 %v1857_v50, %v1520_v49  ;;  %v1312_v56 = vld [vmem:[#allocation7 + $0x30] sm:$0xf]  ;;  %v1448_v57 = vld [vmem:[#allocation7 + $0x140] sm:$0xf] }
  0x27   :  { %632 = vmatpush.bf16.msrb.mxu2 %v1473_v30  ;;  %645 = vmatpush.bf16.msrb.mxu3 %v1537_v31  ;;  %v1385_v59 = vor.u32 %v1823_v53, %v1384_v52  ;;  %v1839_v60 = vld [vmem:[#allocation7 + $0x144] sm:$0xf0]  ;;  %v1512_v61 = vld [vmem:[#allocation7 + $0x1c0] sm:$0xf]  ;;  %v1805_v63 = vld [vmem:[#allocation7 + $0x34] sm:$0xf0] }
  0x28   :  { %v1855_v62 = vld [vmem:[#allocation7 + $0x1c4] sm:$0xf0]  ;;  %v1376_v0 = vld [vmem:[#allocation7 + $0xb0] sm:$0xf]  ;;  %v1821_v1 = vld [vmem:[#allocation7 + $0xb4] sm:$0xf0]  ;;  %v1449_v2 = vor.u32 %v1839_v60, %v1448_v57  ;;  %v1313_v6 = vor.u32 %v1805_v63, %v1312_v56 }
  0x29   :  { %607 = vmatpush.bf16.msrb.mxu0 %v1337_v34  ;;  %620 = vmatpush.bf16.msrb.mxu1 %v1401_v35  ;;  %v1513_v3 = vor.u32 %v1855_v62, %v1512_v61  ;;  %v1304_v4 = vld [vmem:[#allocation7 + $0x20] sm:$0xf]  ;;  %v1440_v5 = vld [vmem:[#allocation7 + $0x130] sm:$0xf]  ;;  %v1377_v7 = vor.u32 %v1821_v1, %v1376_v0  ;;  %v1837_v8 = vld [vmem:[#allocation7 + $0x134] sm:$0xf0] }
  0x2a   :  { %v1504_v9 = vld [vmem:[#allocation7 + $0x1b0] sm:$0xf]  ;;  %v1853_v10 = vld [vmem:[#allocation7 + $0x1b4] sm:$0xf0]  ;;  %v1803_v11 = vld [vmem:[#allocation7 + $0x24] sm:$0xf0]  ;;  %v1441_v14 = vor.u32 %v1837_v8, %v1440_v5 }
  0x2b   :  { %633 = vmatpush.bf16.msrb.mxu2 %v1465_v42  ;;  %646 = vmatpush.bf16.msrb.mxu3 %v1529_v43  ;;  %v1368_v12 = vld [vmem:[#allocation7 + $0xa0] sm:$0xf]  ;;  %v1819_v13 = vld [vmem:[#allocation7 + $0xa4] sm:$0xf0]  ;;  %v1505_v15 = vor.u32 %v1853_v10, %v1504_v9  ;;  %v1296_v16 = vld [vmem:[#allocation7 + $0x10] sm:$0xf]  ;;  %v1305_v18 = vor.u32 %v1803_v11, %v1304_v4 }
  0x2c   :  { %v1432_v17 = vld [vmem:[#allocation7 + $0x120] sm:$0xf]  ;;  %v1369_v19 = vor.u32 %v1819_v13, %v1368_v12  ;;  %v1835_v20 = vld [vmem:[#allocation7 + $0x124] sm:$0xf0]  ;;  %v1801_v23 = vld [vmem:[#allocation7 + $0x14] sm:$0xf0] }
  0x2d   :  { %608 = vmatpush.bf16.msrb.mxu0 %v1329_v46  ;;  %621 = vmatpush.bf16.msrb.mxu1 %v1393_v47  ;;  %v1496_v21 = vld [vmem:[#allocation7 + $0x1a0] sm:$0xf]  ;;  %v1851_v22 = vld [vmem:[#allocation7 + $0x1a4] sm:$0xf0]  ;;  %v1360_v24 = vld [vmem:[#allocation7 + $0x90] sm:$0xf]  ;;  %v1433_v26 = vor.u32 %v1835_v20, %v1432_v17  ;;  %v1297_v31 = vor.u32 %v1801_v23, %v1296_v16 }
  0x2e   :  { %v1817_v25 = vld [vmem:[#allocation7 + $0x94] sm:$0xf0]  ;;  %v1497_v27 = vor.u32 %v1851_v22, %v1496_v21  ;;  %v1288_v28 = vld [vmem:[#allocation7] sm:$0xf]  ;;  %v1799_v29 = vld [vmem:[#allocation7 + $0x4] sm:$0xf0] }
  0x2f   :  { %634 = vmatpush.bf16.msrb.mxu2 %v1457_v54  ;;  %647 = vmatpush.bf16.msrb.mxu3 %v1521_v55  ;;  %v1424_v30 = vld [vmem:[#allocation7 + $0x110] sm:$0xf]  ;;  %v1361_v32 = vor.u32 %v1817_v25, %v1360_v24  ;;  %v1833_v33 = vld [vmem:[#allocation7 + $0x114] sm:$0xf0]  ;;  %v1352_v36 = vld [vmem:[#allocation7 + $0x80] sm:$0xf]  ;;  %v1289_v46 = vor.u32 %v1799_v29, %v1288_v28 }
  0x30   :  { %v1488_v34 = vld [vmem:[#allocation7 + $0x190] sm:$0xf]  ;;  %v1849_v35 = vld [vmem:[#allocation7 + $0x194] sm:$0xf0]  ;;  %v1815_v37 = vld [vmem:[#allocation7 + $0x84] sm:$0xf0]  ;;  %v1425_v42 = vor.u32 %v1833_v33, %v1424_v30 }
  0x31   :  { %609 = vmatpush.bf16.msrb.mxu0 %v1321_v58  ;;  %622 = vmatpush.bf16.msrb.mxu1 %v1385_v59  ;;  %v1812_v38 = vld [vmem:[#allocation7 + $0x74] sm:$0xf]  ;;  %v1346_v39 = vld [vmem:[#allocation7 + $0x78] sm:$0xf0]  ;;  %v1489_v43 = vor.u32 %v1849_v35, %v1488_v34  ;;  %v1416_v44 = vld [vmem:[#allocation7 + $0x100] sm:$0xf]  ;;  %v1353_v47 = vor.u32 %v1815_v37, %v1352_v36 }
  0x32   :  { %v1828_v40 = vld [vmem:[#allocation7 + $0xf4] sm:$0xf]  ;;  %v1410_v41 = vld [vmem:[#allocation7 + $0xf8] sm:$0xf0]  ;;  %v1831_v45 = vld [vmem:[#allocation7 + $0x104] sm:$0xf0]  ;;  %v1349_v52 = vor.u32 %v1812_v38, %v1346_v39 }
  0x33   :  { %635 = vmatpush.bf16.msrb.mxu2 %v1449_v2  ;;  %648 = vmatpush.bf16.msrb.mxu3 %v1513_v3  ;;  %v1810_v48 = vld [vmem:[#allocation7 + $0x64] sm:$0xf]  ;;  %v1480_v49 = vld [vmem:[#allocation7 + $0x180] sm:$0xf]  ;;  %v1847_v50 = vld [vmem:[#allocation7 + $0x184] sm:$0xf0]  ;;  %v1413_v53 = vor.u32 %v1828_v40, %v1410_v41  ;;  %v1417_v60 = vor.u32 %v1831_v45, %v1416_v44 }
  0x34   :  { %v1844_v51 = vld [vmem:[#allocation7 + $0x174] sm:$0xf]  ;;  %v1474_v54 = vld [vmem:[#allocation7 + $0x178] sm:$0xf0]  ;;  %v1338_v57 = vld [vmem:[#allocation7 + $0x68] sm:$0xf0]  ;;  %v1481_v61 = vor.u32 %v1847_v50, %v1480_v49 }
  0x35   :  { %610 = vmatpush.bf16.msrb.mxu0 %v1313_v6  ;;  %623 = vmatpush.bf16.msrb.mxu1 %v1377_v7  ;;  %v1860_v55 = vld [vmem:[#allocation7 + $0x1f4] sm:$0xf]  ;;  %v1538_v56 = vld [vmem:[#allocation7 + $0x1f8] sm:$0xf0]  ;;  %v1826_v58 = vld [vmem:[#allocation7 + $0xe4] sm:$0xf]  ;;  %v1477_v62 = vor.u32 %v1844_v51, %v1474_v54  ;;  %v1341_v0 = vor.u32 %v1810_v48, %v1338_v57 }
  0x36   :  { %v1402_v59 = vld [vmem:[#allocation7 + $0xe8] sm:$0xf0]  ;;  %v1541_v63 = vor.u32 %v1860_v55, %v1538_v56  ;;  %v1808_v2 = vld [vmem:[#allocation7 + $0x54] sm:$0xf]  ;;  %v1330_v3 = vld [vmem:[#allocation7 + $0x58] sm:$0xf0] }
  0x37   :  { %636 = vmatpush.bf16.msrb.mxu2 %v1441_v14  ;;  %649 = vmatpush.bf16.msrb.mxu3 %v1505_v15  ;;  %v1405_v1 = vor.u32 %v1826_v58, %v1402_v59  ;;  %v1824_v4 = vld [vmem:[#allocation7 + $0xd4] sm:$0xf]  ;;  %v1333_v5 = vor.u32 %v1808_v2, %v1330_v3  ;;  %v1394_v6 = vld [vmem:[#allocation7 + $0xd8] sm:$0xf0]  ;;  %v1842_v8 = vld [vmem:[#allocation7 + $0x164] sm:$0xf] }
  0x38   :  { %v1397_v7 = vor.u32 %v1824_v4, %v1394_v6  ;;  %v1466_v9 = vld [vmem:[#allocation7 + $0x168] sm:$0xf0]  ;;  %v1858_v11 = vld [vmem:[#allocation7 + $0x1e4] sm:$0xf]  ;;  %v1840_v20 = vld [vmem:[#allocation7 + $0x154] sm:$0xf] }
  0x39   :  { %611 = vmatpush.bf16.msrb.mxu0 %v1305_v18  ;;  %624 = vmatpush.bf16.msrb.mxu1 %v1369_v19  ;;  %v1469_v10 = vor.u32 %v1842_v8, %v1466_v9  ;;  %v1530_v12 = vld [vmem:[#allocation7 + $0x1e8] sm:$0xf0]  ;;  %v1806_v14 = vld [vmem:[#allocation7 + $0x44] sm:$0xf]  ;;  %v1458_v21 = vld [vmem:[#allocation7 + $0x158] sm:$0xf0] }
  0x3a   :  { %v1533_v13 = vor.u32 %v1858_v11, %v1530_v12  ;;  %v1322_v15 = vld [vmem:[#allocation7 + $0x48] sm:$0xf0]  ;;  %v1822_v16 = vld [vmem:[#allocation7 + $0xc4] sm:$0xf]  ;;  %v1856_v22 = vld [vmem:[#allocation7 + $0x1d4] sm:$0xf]  ;;  %v1461_v23 = vor.u32 %v1840_v20, %v1458_v21 }
  0x3b   :  { %637 = vmatpush.bf16.msrb.mxu2 %v1433_v26  ;;  %650 = vmatpush.bf16.msrb.mxu3 %v1497_v27  ;;  %v1325_v17 = vor.u32 %v1806_v14, %v1322_v15  ;;  %v1386_v18 = vld [vmem:[#allocation7 + $0xc8] sm:$0xf0]  ;;  %v1522_v24 = vld [vmem:[#allocation7 + $0x1d8] sm:$0xf0]  ;;  %v1804_v26 = vld [vmem:[#allocation7 + $0x34] sm:$0xf] }
  0x3c   :  { %v1389_v19 = vor.u32 %v1822_v16, %v1386_v18  ;;  %v1525_v25 = vor.u32 %v1856_v22, %v1522_v24  ;;  %v1314_v27 = vld [vmem:[#allocation7 + $0x38] sm:$0xf0]  ;;  %v1820_v29 = vld [vmem:[#allocation7 + $0xb4] sm:$0xf]  ;;  %v1450_v33 = vld [vmem:[#allocation7 + $0x148] sm:$0xf0] }
  0x3d   :  { %612 = vmatpush.bf16.msrb.mxu0 %v1297_v31  ;;  %625 = vmatpush.bf16.msrb.mxu1 %v1361_v32  ;;  %v1317_v28 = vor.u32 %v1804_v26, %v1314_v27  ;;  %v1378_v30 = vld [vmem:[#allocation7 + $0xb8] sm:$0xf0]  ;;  %v1838_v32 = vld [vmem:[#allocation7 + $0x144] sm:$0xf]  ;;  %v1514_v36 = vld [vmem:[#allocation7 + $0x1c8] sm:$0xf0] }
  0x3e   :  { %v1381_v31 = vor.u32 %v1820_v29, %v1378_v30  ;;  %v1854_v34 = vld [vmem:[#allocation7 + $0x1c4] sm:$0xf]  ;;  %v1453_v35 = vor.u32 %v1838_v32, %v1450_v33  ;;  %v1306_v39 = vld [vmem:[#allocation7 + $0x28] sm:$0xf0]  ;;  %v1836_v44 = vld [vmem:[#allocation7 + $0x134] sm:$0xf] }
  0x3f   :  { %638 = vmatpush.bf16.msrb.mxu2 %v1425_v42  ;;  %651 = vmatpush.bf16.msrb.mxu3 %v1489_v43  ;;  %v1517_v37 = vor.u32 %v1854_v34, %v1514_v36  ;;  %v1802_v38 = vld [vmem:[#allocation7 + $0x24] sm:$0xf]  ;;  %v1370_v42 = vld [vmem:[#allocation7 + $0xa8] sm:$0xf0]  ;;  %v1442_v45 = vld [vmem:[#allocation7 + $0x138] sm:$0xf0] }
  0x40   :  { %v1818_v40 = vld [vmem:[#allocation7 + $0xa4] sm:$0xf]  ;;  %v1309_v41 = vor.u32 %v1802_v38, %v1306_v39  ;;  %v1506_v48 = vld [vmem:[#allocation7 + $0x1b8] sm:$0xf0]  ;;  %v1800_v50 = vld [vmem:[#allocation7 + $0x14] sm:$0xf] }
  0x41   :  { %613 = vmatpush.bf16.msrb.mxu0 %v1289_v46  ;;  %626 = vmatpush.bf16.msrb.mxu1 %v1353_v47  ;;  %v1373_v43 = vor.u32 %v1818_v40, %v1370_v42  ;;  %v1852_v46 = vld [vmem:[#allocation7 + $0x1b4] sm:$0xf]  ;;  %v1445_v47 = vor.u32 %v1836_v44, %v1442_v45  ;;  %v1298_v51 = vld [vmem:[#allocation7 + $0x18] sm:$0xf0]  ;;  %v1834_v55 = vld [vmem:[#allocation7 + $0x124] sm:$0xf] }
  0x42   :  { %v1509_v49 = vor.u32 %v1852_v46, %v1506_v48  ;;  %v1362_v54 = vld [vmem:[#allocation7 + $0x98] sm:$0xf0]  ;;  %v1434_v56 = vld [vmem:[#allocation7 + $0x128] sm:$0xf0]  ;;  %v1850_v59 = vld [vmem:[#allocation7 + $0x1a4] sm:$0xf] }
  0x43   :  { %639 = vmatpush.bf16.msrb.mxu2 %v1417_v60  ;;  %652 = vmatpush.bf16.msrb.mxu3 %v1481_v61  ;;  %v1437_v58 = vor.u32 %v1834_v55, %v1434_v56  ;;  %v1498_v60 = vld [vmem:[#allocation7 + $0x1a8] sm:$0xf0]  ;;  %v1798_v61 = vld [vmem:[#allocation7 + $0x4] sm:$0xf]  ;;  %v1832_v4 = vld [vmem:[#allocation7 + $0x114] sm:$0xf] }
  0x44   :  { %v1848_v6 = vld [vmem:[#allocation7 + $0x194] sm:$0xf]  ;;  %v1490_v8 = vld [vmem:[#allocation7 + $0x198] sm:$0xf0]  ;;  %v1418_v11 = vld [vmem:[#allocation7 + $0x108] sm:$0xf0] }
  0x45   :  { %658 = vmatpush.bf16.msra.mxu0 %v1349_v52  ;;  %671 = vmatpush.bf16.msra.mxu1 %v1413_v53  ;;  %v1816_v52 = vld [vmem:[#allocation7 + $0x94] sm:$0xf]  ;;  %v1301_v53 = vor.u32 %v1800_v50, %v1298_v51  ;;  %v1493_v9 = vor.u32 %v1848_v6, %v1490_v8  ;;  %v1846_v12 = vld [vmem:[#allocation7 + $0x184] sm:$0xf]  ;;  %v1482_v14 = vld [vmem:[#allocation7 + $0x188] sm:$0xf0] }
  0x46   :  { %v1365_v57 = vor.u32 %v1816_v52, %v1362_v54  ;;  %v1485_v15 = vor.u32 %v1846_v12, %v1482_v14  ;;  %v115_v16 = vld [vmem:[#allocation11] sm:$0xf]  ;;  %v1877_v24 = vld [vmem:[#allocation8 + $0x74] sm:$0xf0]  ;;  %v1875_v33 = vld [vmem:[#allocation8 + $0x64] sm:$0xf0] }
  0x47   :  { %684 = vmatpush.bf16.msra.mxu2 %v1477_v62  ;;  %697 = vmatpush.bf16.msra.mxu3 %v1541_v63  ;;  %v1501_v62 = vor.u32 %v1850_v59, %v1498_v60  ;;  %v1290_v63 = vld [vmem:[#allocation7 + $0x8] sm:$0xf0]  ;;  %v123_v18 = vperm.slane %v115_v16, 1  ;;  %v124_v27 = vperm.slane %v115_v16, 2  ;;  %v1592_v32 = vld [vmem:[#allocation8 + $0x60] sm:$0xf] }
  0x48   :  { %v1293_v2 = vor.u32 %v1798_v61, %v1290_v63  ;;  %v1876_v40 = vld [vmem:[#allocation8 + $0x74] sm:$0xf]  ;;  %v1593_v42 = vor.u32 %v1875_v33, %v1592_v32  ;;  %v1873_v44 = vld [vmem:[#allocation8 + $0x54] sm:$0xf0]  ;;  %v1874_v50 = vld [vmem:[#allocation8 + $0x64] sm:$0xf] }
  0x49   :  { %659 = vmatpush.bf16.msra.mxu0 %v1341_v0  ;;  %672 = vmatpush.bf16.msra.mxu1 %v1405_v1  ;;  %v1814_v0 = vld [vmem:[#allocation7 + $0x84] sm:$0xf]  ;;  %v1354_v1 = vld [vmem:[#allocation7 + $0x88] sm:$0xf0]  ;;  %v1872_v56 = vld [vmem:[#allocation8 + $0x54] sm:$0xf] }
  0x4a   :  { %v1357_v3 = vor.u32 %v1814_v0, %v1354_v1  ;;  %v1594_v51 = vld [vmem:[#allocation8 + $0x68] sm:$0xf0]  ;;  %v1576_v59 = vld [vmem:[#allocation8 + $0x40] sm:$0xf]  ;;  %v1871_v60 = vld [vmem:[#allocation8 + $0x44] sm:$0xf0] }
  0x4b   :  { %685 = vmatpush.bf16.msra.mxu2 %v1469_v10  ;;  %698 = vmatpush.bf16.msra.mxu3 %v1533_v13  ;;  %v1830_v10 = vld [vmem:[#allocation7 + $0x104] sm:$0xf]  ;;  %v1597_v55 = vor.u32 %v1874_v50, %v1594_v51  ;;  %v1578_v63 = vld [vmem:[#allocation8 + $0x48] sm:$0xf0]  ;;  %v1568_v1 = vld [vmem:[#allocation8 + $0x30] sm:$0xf] }
  0x4c   :  { %v1421_v13 = vor.u32 %v1830_v10, %v1418_v11  ;;  %v1870_v61 = vld [vmem:[#allocation8 + $0x44] sm:$0xf]  ;;  %v1868_v6 = vld [vmem:[#allocation8 + $0x34] sm:$0xf]  ;;  %v1666_v11 = vld [vmem:[#allocation8 + $0xf8] sm:$0xf0] }
  0x4d   :  { %660 = vmatpush.bf16.msra.mxu0 %v1333_v5  ;;  %673 = vmatpush.bf16.msra.mxu1 %v1397_v7  ;;  %v1426_v5 = vld [vmem:[#allocation7 + $0x118] sm:$0xf0]  ;;  %v1581_v0 = vor.u32 %v1870_v61, %v1578_v63  ;;  %v1892_v10 = vld [vmem:[#allocation8 + $0xf4] sm:$0xf]  ;;  %v1867_v14 = vld [vmem:[#allocation8 + $0x24] sm:$0xf0] }
  0x4e   :  { %v1429_v7 = vor.u32 %v1832_v4, %v1426_v5  ;;  %v1893_v5 = vld [vmem:[#allocation8 + $0xf4] sm:$0xf0]  ;;  %v1669_v12 = vor.u32 %v1892_v10, %v1666_v11  ;;  %v1884_v51 = vld [vmem:[#allocation8 + $0xb4] sm:$0xf]  ;;  %v1616_v61 = vld [vmem:[#allocation8 + $0x90] sm:$0xf] }
  0x4f   :  { %686 = vmatpush.bf16.msra.mxu2 %v1461_v23  ;;  %699 = vmatpush.bf16.msra.mxu3 %v1525_v25  ;;  %v1600_v23 = vld [vmem:[#allocation8 + $0x70] sm:$0xf]  ;;  %v1885_v50 = vld [vmem:[#allocation8 + $0xb4] sm:$0xf0]  ;;  %v1880_v63 = vld [vmem:[#allocation8 + $0x94] sm:$0xf] }
  0x50   :  { %v1601_v29 = vor.u32 %v1877_v24, %v1600_v23  ;;  %v1658_v23 = vld [vmem:[#allocation8 + $0xe8] sm:$0xf0]  ;;  %s1267_s5 = sshll.u32 %s2129_s4, 4  ;;  %s1269_s27 = sshll.u32 %s2200_s6, 4  ;;  %s1268_s5 = int_to_ptr.vmem [resolvable:$true] %s1267_s5  ;;  %s1270_s27 = int_to_ptr.hbm [resolvable:$true] %s1269_s27 }
  0x51   :  { %661 = vmatpush.bf16.msra.mxu0 %v1325_v17  ;;  %674 = vmatpush.bf16.msra.mxu1 %v1389_v19  ;;  %v122_v17 = vperm.slane %v115_v16, 0  ;;  %v1610_v10 = vld [vmem:[#allocation8 + $0x88] sm:$0xf0] }
  0x53   :  { %687 = vmatpush.bf16.msra.mxu2 %v1453_v35  ;;  %700 = vmatpush.bf16.msra.mxu3 %v1517_v37 }
  0x55   :  { %662 = vmatpush.bf16.msra.mxu0 %v1317_v28  ;;  %675 = vmatpush.bf16.msra.mxu1 %v1381_v31  ;;  %v125_v28 = vperm.slane %v115_v16, 3 }
  0x57   :  { %688 = vmatpush.bf16.msra.mxu2 %v1445_v47  ;;  %701 = vmatpush.bf16.msra.mxu3 %v1509_v49 }
  0x59   :  { %663 = vmatpush.bf16.msra.mxu0 %v1309_v41  ;;  %676 = vmatpush.bf16.msra.mxu1 %v1373_v43  ;;  %v1602_v41 = vld [vmem:[#allocation8 + $0x78] sm:$0xf0]  ;;  %v1584_v43 = vld [vmem:[#allocation8 + $0x50] sm:$0xf] }
  0x5a   :  { %v1605_v47 = vor.u32 %v1876_v40, %v1602_v41  ;;  %v1585_v52 = vor.u32 %v1873_v44, %v1584_v43  ;;  %v1640_v40 = vld [vmem:[#allocation8 + $0xc0] sm:$0xf]  ;;  %v1887_v41 = vld [vmem:[#allocation8 + $0xc4] sm:$0xf0]  ;;  %v1546_v44 = vld [vmem:[#allocation8 + $0x8] sm:$0xf0] }
  0x5b   :  { %689 = vmatpush.bf16.msra.mxu2 %v1437_v58  ;;  %702 = vmatpush.bf16.msra.mxu3 %v1501_v62  ;;  %v1577_v62 = vor.u32 %v1871_v60, %v1576_v59  ;;  %v1641_v43 = vor.u32 %v1887_v41, %v1640_v40  ;;  %v1626_v59 = vld [vmem:[#allocation8 + $0xa8] sm:$0xf0] }
  0x5d   :  { %664 = vmatpush.bf16.msra.mxu0 %v1301_v53  ;;  %677 = vmatpush.bf16.msra.mxu1 %v1365_v57  ;;  %v1586_v57 = vld [vmem:[#allocation8 + $0x58] sm:$0xf0] }
  0x5e   :  { %v1589_v58 = vor.u32 %v1872_v56, %v1586_v57  ;;  %v1883_v56 = vld [vmem:[#allocation8 + $0xa4] sm:$0xf0]  ;;  %v1882_v57 = vld [vmem:[#allocation8 + $0xa4] sm:$0xf] }
  0x5f   :  { %690 = vmatpush.bf16.msra.mxu2 %v1429_v7  ;;  %703 = vmatpush.bf16.msra.mxu3 %v1493_v9  ;;  %v1570_v7 = vld [vmem:[#allocation8 + $0x38] sm:$0xf0]  ;;  %v1629_v60 = vor.u32 %v1882_v57, %v1626_v59  ;;  %v1905_v59 = vld [vmem:[#allocation10 + $0x54] sm:$0xf0] }
  0x60   :  { %v1573_v9 = vor.u32 %v1868_v6, %v1570_v7  ;;  %v1608_v6 = vld [vmem:[#allocation8 + $0x80] sm:$0xf]  ;;  %v1879_v7 = vld [vmem:[#allocation8 + $0x84] sm:$0xf0] }
  0x61   :  { %665 = vmatpush.bf16.msra.mxu0 %v1293_v2  ;;  %678 = vmatpush.bf16.msra.mxu1 %v1357_v3  ;;  %v1869_v2 = vld [vmem:[#allocation8 + $0x34] sm:$0xf0]  ;;  %v1664_v3 = vld [vmem:[#allocation8 + $0xf0] sm:$0xf] }
  0x62   :  { %v1569_v4 = vor.u32 %v1869_v2, %v1568_v1  ;;  %v1665_v8 = vor.u32 %v1893_v5, %v1664_v3  ;;  %v1618_v1 = vld [vmem:[#allocation8 + $0x98] sm:$0xf0]  ;;  %v116_v3 = vld [vmem:[#allocation11 + $0x4] sm:$0x3] }
  0x63   :  { %691 = vmatpush.bf16.msra.mxu2 %v1421_v13  ;;  %704 = vmatpush.bf16.msra.mxu3 %v1485_v15  ;;  %v1560_v13 = vld [vmem:[#allocation8 + $0x20] sm:$0xf]  ;;  %v1621_v2 = vor.u32 %v1880_v63, %v1618_v1  ;;  %v282_v11 = vperm.slane %v116_v3, 0  ;;  %v1923_v1 = vld [vmem:[#allocation10 + $0xe4] sm:$0xf0] }
  0x64   :  { %v1656_v15 = vld [vmem:[#allocation8 + $0xe0] sm:$0xf]  ;;  %v1561_v16 = vor.u32 %v1867_v14, %v1560_v13  ;;  %v1728_v14 = vld [vmem:[#allocation10 + $0x70] sm:$0xf] }
  0xa1   :  { %v166_v19 = vpop.f32.mrf.mxu0  ;;  %v179_v20 = vpop.f32.mrf.mxu1 }
  0xa2   :  { %v167_v21 = vadd.f32 %v166_v19, %v122_v17  ;;  %v180_v22 = vadd.f32 %v179_v20, %v123_v18  ;;  %v1891_v17 = vld [vmem:[#allocation8 + $0xe4] sm:$0xf0]  ;;  %v1866_v18 = vld [vmem:[#allocation8 + $0x24] sm:$0xf]  ;;  %v1562_v19 = vld [vmem:[#allocation8 + $0x28] sm:$0xf0] }
  0xa3   :  { %v1657_v20 = vor.u32 %v1891_v17, %v1656_v15  ;;  %v1909_v15 = vld [vmem:[#allocation10 + $0x74] sm:$0xf0] }
  0xa4   :  { %v209_v25 = vmax.f32 %v167_v21, 0.0  ;;  %v210_v26 = vmax.f32 %v180_v22, 0.0  ;;  %v1565_v21 = vor.u32 %v1866_v18, %v1562_v19  ;;  %v1890_v22 = vld [vmem:[#allocation8 + $0xe4] sm:$0xf]  ;;  %v1729_v17 = vor.u32 %v1909_v15, %v1728_v14  ;;  %v1730_v18 = vld [vmem:[#allocation10 + $0x78] sm:$0xf0] }
  0xa5   :  { %v1661_v24 = vor.u32 %v1890_v22, %v1658_v23  ;;  %v1720_v19 = vld [vmem:[#allocation10 + $0x60] sm:$0xf]  ;;  %v1920_v14 = vld [vmem:[#allocation10 + $0xd4] sm:$0xf] }
  0xa6   :  { %v213_v30 = vpack.c.bf16 %v209_v25, %v209_v25  ;;  %v214_v31 = vpack.c.bf16 %v210_v26, %v210_v26  ;;  %v1552_v25 = vld [vmem:[#allocation8 + $0x10] sm:$0xf]  ;;  %v1865_v26 = vld [vmem:[#allocation8 + $0x14] sm:$0xf0] }
  0xa8   :  { %614 = vmatmul.bf16.vlgmr.msrb.gmra.mxu0 %v213_v30  ;;  %627 = vmatmul.bf16.vlgmr.msrb.gmra.mxu1 %v214_v31 }
  0xa9   :  { %v192_v34 = vpop.f32.mrf.mxu2  ;;  %v205_v35 = vpop.f32.mrf.mxu3  ;;  %911 = vmatpush.bf16.msrb.mxu0 %v1601_v29  ;;  %924 = vmatpush.bf16.msrb.mxu1 %v1665_v8  ;;  %v1889_v29 = vld [vmem:[#allocation8 + $0xd4] sm:$0xf0]  ;;  %v1878_v8 = vld [vmem:[#allocation8 + $0x84] sm:$0xf] }
  0xaa   :  { %v193_v36 = vadd.f32 %v192_v34, %v124_v27  ;;  %v206_v37 = vadd.f32 %v205_v35, %v125_v28  ;;  %v168_v38 = vpop.f32.mrf.mxu0  ;;  %v181_v39 = vpop.f32.mrf.mxu1  ;;  %v1648_v27 = vld [vmem:[#allocation8 + $0xd0] sm:$0xf]  ;;  %v1553_v28 = vor.u32 %v1865_v26, %v1552_v25  ;;  %v1888_v34 = vld [vmem:[#allocation8 + $0xd4] sm:$0xf]  ;;  %v1650_v35 = vld [vmem:[#allocation8 + $0xd8] sm:$0xf0] }
  0xab   :  { %v1649_v32 = vor.u32 %v1889_v29, %v1648_v27  ;;  %v1863_v38 = vld [vmem:[#allocation8 + $0x4] sm:$0xf0]  ;;  %v1722_v25 = vld [vmem:[#allocation10 + $0x68] sm:$0xf0]  ;;  %v1792_v26 = vld [vmem:[#allocation10 + $0xf0] sm:$0xf] }
  0xac   :  { %v211_v45 = vmax.f32 %v193_v36, 0.0  ;;  %v212_v46 = vmax.f32 %v206_v37, 0.0  ;;  %v1653_v36 = vor.u32 %v1888_v34, %v1650_v35  ;;  %v1544_v37 = vld [vmem:[#allocation8] sm:$0xf]  ;;  %v1924_v29 = vld [vmem:[#allocation10 + $0xf4] sm:$0xf] }
  0xad   :  { %912 = vmatpush.bf16.msrb.mxu0 %v1593_v42  ;;  %925 = vmatpush.bf16.msrb.mxu1 %v1657_v20  ;;  %v1545_v39 = vor.u32 %v1863_v38, %v1544_v37  ;;  %v1862_v42 = vld [vmem:[#allocation8 + $0x4] sm:$0xf]  ;;  %v1907_v20 = vld [vmem:[#allocation10 + $0x64] sm:$0xf0] }
  0xae   :  { %v215_v48 = vpack.c.bf16 %v211_v45, %v211_v45  ;;  %v216_v49 = vpack.c.bf16 %v212_v46, %v212_v46  ;;  %v1886_v45 = vld [vmem:[#allocation8 + $0xc4] sm:$0xf]  ;;  %v1642_v46 = vld [vmem:[#allocation8 + $0xc8] sm:$0xf0]  ;;  %v1721_v27 = vor.u32 %v1907_v20, %v1720_v19  ;;  %v1901_v19 = vld [vmem:[#allocation10 + $0x34] sm:$0xf0] }
  0xaf   :  { %v1900_v20 = vld [vmem:[#allocation10 + $0x34] sm:$0xf] }
  0xb0   :  { %640 = vmatmul.bf16.vlgmr.msrb.gmra.mxu2 %v215_v48  ;;  %653 = vmatmul.bf16.vlgmr.msrb.gmra.mxu3 %v216_v49 }
  0xb1   :  { %v194_v53 = vpop.f32.mrf.mxu2  ;;  %v207_v54 = vpop.f32.mrf.mxu3  ;;  %937 = vmatpush.bf16.msrb.mxu2 %v1605_v47  ;;  %913 = vmatpush.bf16.msrb.mxu0 %v1585_v52  ;;  %v1549_v47 = vor.u32 %v1862_v42, %v1546_v44 }
  0xb2   :  { %950 = vmatpush.bf16.msrb.mxu3 %v1669_v12  ;;  %926 = vmatpush.bf16.msrb.mxu1 %v1649_v32  ;;  %v1634_v53 = vld [vmem:[#allocation8 + $0xb8] sm:$0xf0]  ;;  %v1613_v12 = vor.u32 %v1878_v8, %v1610_v10  ;;  %v1902_v8 = vld [vmem:[#allocation10 + $0x44] sm:$0xf]  ;;  %v1706_v10 = vld [vmem:[#allocation10 + $0x48] sm:$0xf0] }
  0xb3   :  { %v1637_v54 = vor.u32 %v1884_v51, %v1634_v53 }
  0xb5   :  { %938 = vmatpush.bf16.msrb.mxu2 %v1597_v55  ;;  %914 = vmatpush.bf16.msrb.mxu0 %v1577_v62  ;;  %v1624_v55 = vld [vmem:[#allocation8 + $0xa0] sm:$0xf]  ;;  %v1881_v62 = vld [vmem:[#allocation8 + $0x94] sm:$0xf0] }
  0xb6   :  { %951 = vmatpush.bf16.msrb.mxu3 %v1661_v24  ;;  %927 = vmatpush.bf16.msrb.mxu1 %v1641_v43  ;;  %v1906_v24 = vld [vmem:[#allocation10 + $0x64] sm:$0xf]  ;;  %v283_v43 = vperm.slane %v116_v3, 1 }
  0xb7   :  { %v1725_v32 = vor.u32 %v1906_v24, %v1722_v25  ;;  %v1768_v24 = vld [vmem:[#allocation10 + $0xc0] sm:$0xf]  ;;  %v1919_v25 = vld [vmem:[#allocation10 + $0xc4] sm:$0xf0] }
  0xb8   :  { %666 = vmatmul.bf16.vlgmr.msra.gmra.mxu0 %v213_v30  ;;  %679 = vmatmul.bf16.vlgmr.msra.gmra.mxu1 %v214_v31  ;;  %v1864_v30 = vld [vmem:[#allocation8 + $0x14] sm:$0xf]  ;;  %v1554_v31 = vld [vmem:[#allocation8 + $0x18] sm:$0xf0] }
  0xb9   :  { %939 = vmatpush.bf16.msrb.mxu2 %v1589_v58  ;;  %915 = vmatpush.bf16.msrb.mxu0 %v1569_v4  ;;  %v1557_v33 = vor.u32 %v1864_v30, %v1554_v31  ;;  %v1625_v58 = vor.u32 %v1883_v56, %v1624_v55  ;;  %v1794_v30 = vld [vmem:[#allocation10 + $0xf8] sm:$0xf0] }
  0xba   :  { %952 = vmatpush.bf16.msrb.mxu3 %v1653_v36  ;;  %v1797_v34 = vor.u32 %v1924_v29, %v1794_v30  ;;  %v1688_v29 = vld [vmem:[#allocation10 + $0x20] sm:$0xf]  ;;  %v1899_v30 = vld [vmem:[#allocation10 + $0x24] sm:$0xf0] }
  0xbd   :  { %940 = vmatpush.bf16.msrb.mxu2 %v1581_v0  ;;  %916 = vmatpush.bf16.msrb.mxu0 %v1561_v16  ;;  %v1617_v0 = vor.u32 %v1881_v62, %v1616_v61  ;;  %v1908_v16 = vld [vmem:[#allocation10 + $0x74] sm:$0xf]  ;;  %v1714_v62 = vld [vmem:[#allocation10 + $0x58] sm:$0xf0] }
  0xbe   :  { %v1733_v23 = vor.u32 %v1908_v16, %v1730_v18  ;;  %v1778_v16 = vld [vmem:[#allocation10 + $0xd8] sm:$0xf0]  ;;  %v1696_v18 = vld [vmem:[#allocation10 + $0x30] sm:$0xf] }
  0xc0   :  { %692 = vmatmul.bf16.vlgmr.msra.gmra.mxu2 %v215_v48  ;;  %705 = vmatmul.bf16.vlgmr.msra.gmra.mxu3 %v216_v49  ;;  %v1645_v48 = vor.u32 %v1886_v45, %v1642_v46  ;;  %v1632_v49 = vld [vmem:[#allocation8 + $0xb0] sm:$0xf] }
  0xc1   :  { %941 = vmatpush.bf16.msrb.mxu2 %v1573_v9  ;;  %917 = vmatpush.bf16.msrb.mxu0 %v1553_v28  ;;  %v1633_v52 = vor.u32 %v1885_v50, %v1632_v49  ;;  %v1609_v9 = vor.u32 %v1879_v7, %v1608_v6  ;;  %v1925_v28 = vld [vmem:[#allocation10 + $0xf4] sm:$0xf0]  ;;  %v1704_v6 = vld [vmem:[#allocation10 + $0x40] sm:$0xf]  ;;  %v1903_v7 = vld [vmem:[#allocation10 + $0x44] sm:$0xf0] }
  0xc2   :  { %953 = vmatpush.bf16.msrb.mxu3 %v1645_v48 }
  0xc3   :  { %928 = vmatpush.bf16.msrb.mxu1 %v1633_v52 }
  0xc5   :  { %942 = vmatpush.bf16.msrb.mxu2 %v1565_v21  ;;  %918 = vmatpush.bf16.msrb.mxu0 %v1545_v39 }
  0xc6   :  { %954 = vmatpush.bf16.msrb.mxu3 %v1637_v54 }
  0xc7   :  { %929 = vmatpush.bf16.msrb.mxu1 %v1625_v58  ;;  %v1712_v58 = vld [vmem:[#allocation10 + $0x50] sm:$0xf] }
  0xc8   :  { %v1713_v61 = vor.u32 %v1905_v59, %v1712_v58  ;;  %v1674_v58 = vld [vmem:[#allocation10 + $0x8] sm:$0xf0] }
  0xc9   :  { %943 = vmatpush.bf16.msrb.mxu2 %v1557_v33  ;;  %1164 = vmatpush.bf16.msra.mxu0 %v1729_v17  ;;  %v1793_v33 = vor.u32 %v1925_v28, %v1792_v26  ;;  %v1781_v17 = vor.u32 %v1920_v14, %v1778_v16  ;;  %v1918_v26 = vld [vmem:[#allocation10 + $0xc4] sm:$0xf]  ;;  %v1770_v28 = vld [vmem:[#allocation10 + $0xc8] sm:$0xf0] }
  0xca   :  { %955 = vmatpush.bf16.msrb.mxu3 %v1629_v60  ;;  %v1904_v60 = vld [vmem:[#allocation10 + $0x54] sm:$0xf] }
  0xcb   :  { %930 = vmatpush.bf16.msrb.mxu1 %v1617_v0  ;;  %v1717_v63 = vor.u32 %v1904_v60, %v1714_v62  ;;  %v1784_v0 = vld [vmem:[#allocation10 + $0xe0] sm:$0xf]  ;;  %v1744_v60 = vld [vmem:[#allocation10 + $0x90] sm:$0xf]  ;;  %v1912_v62 = vld [vmem:[#allocation10 + $0x94] sm:$0xf] }
  0xcc   :  { %v1785_v3 = vor.u32 %v1923_v1, %v1784_v0  ;;  %v1746_v0 = vld [vmem:[#allocation10 + $0x98] sm:$0xf0] }
  0xcd   :  { %944 = vmatpush.bf16.msrb.mxu2 %v1549_v47  ;;  %1165 = vmatpush.bf16.msra.mxu0 %v1721_v27  ;;  %v1769_v27 = vor.u32 %v1919_v25, %v1768_v24  ;;  %v1749_v1 = vor.u32 %v1912_v62, %v1746_v0 }
  0xce   :  { %956 = vmatpush.bf16.msrb.mxu3 %v1621_v2  ;;  %v1922_v2 = vld [vmem:[#allocation10 + $0xe4] sm:$0xf] }
  0xcf   :  { %931 = vmatpush.bf16.msrb.mxu1 %v1609_v9  ;;  %v1705_v9 = vor.u32 %v1903_v7, %v1704_v6  ;;  %v1738_v6 = vld [vmem:[#allocation10 + $0x88] sm:$0xf0] }
  0xd1   :  { %1190 = vmatpush.bf16.msra.mxu2 %v1733_v23  ;;  %1166 = vmatpush.bf16.msra.mxu0 %v1713_v61  ;;  %v1913_v61 = vld [vmem:[#allocation10 + $0x94] sm:$0xf0] }
  0xd2   :  { %957 = vmatpush.bf16.msrb.mxu3 %v1613_v12  ;;  %v1776_v12 = vld [vmem:[#allocation10 + $0xd0] sm:$0xf] }
  0xd3   :  { %1177 = vmatpush.bf16.msra.mxu1 %v1793_v33  ;;  %v1898_v33 = vld [vmem:[#allocation10 + $0x24] sm:$0xf] }
  0xd5   :  { %1191 = vmatpush.bf16.msra.mxu2 %v1725_v32  ;;  %1167 = vmatpush.bf16.msra.mxu0 %v1705_v9  ;;  %v1689_v32 = vor.u32 %v1899_v30, %v1688_v29 }
  0xd6   :  { %1203 = vmatpush.bf16.msra.mxu3 %v1797_v34  ;;  %v1690_v34 = vld [vmem:[#allocation10 + $0x28] sm:$0xf0] }
  0xd7   :  { %1178 = vmatpush.bf16.msra.mxu1 %v1785_v3  ;;  %v1911_v3 = vld [vmem:[#allocation10 + $0x84] sm:$0xf0] }
  0xd9   :  { %1192 = vmatpush.bf16.msra.mxu2 %v1717_v63  ;;  %v1745_v63 = vor.u32 %v1913_v61, %v1744_v60 }
 0x125   :  { %v615_v4 = vpop.f32.mrf.mxu0  ;;  %v628_v5 = vpop.f32.mrf.mxu1 }
 0x126   :  { %v616_v13 = vadd.f32 %v615_v4, %v282_v11  ;;  %v1786_v4 = vld [vmem:[#allocation10 + $0xe8] sm:$0xf0]  ;;  %v1709_v11 = vor.u32 %v1902_v8, %v1706_v10  ;;  %v117_v10 = vld [vmem:[#allocation11 + $0x6] sm:$0x3] }
 0x127   :  { %v748_v16 = vperm.slane %v117_v10, 1 }
 0x128   :  { %v629_v31 = vadd.f32 %v628_v5, %v616_v13  ;;  %v1789_v5 = vor.u32 %v1922_v2, %v1786_v4  ;;  %v1921_v13 = vld [vmem:[#allocation10 + $0xd4] sm:$0xf0]  ;;  %1193 = vmatpush.bf16.msra.mxu2 %v1709_v11  ;;  %v1736_v2 = vld [vmem:[#allocation10 + $0x80] sm:$0xf]  ;;  %v1910_v4 = vld [vmem:[#allocation10 + $0x84] sm:$0xf] }
 0x129   :  { %v1777_v15 = vor.u32 %v1921_v13, %v1776_v12  ;;  %v1741_v7 = vor.u32 %v1910_v4, %v1738_v6  ;;  %v747_v12 = vperm.slane %v117_v10, 0 }
 0x12a   :  { %1204 = vmatpush.bf16.msra.mxu3 %v1789_v5  ;;  %v1737_v5 = vor.u32 %v1911_v3, %v1736_v2 }
 0x12b   :  { %1179 = vmatpush.bf16.msra.mxu1 %v1777_v15 }
 0x12d   :  { %v617_v21 = vpop.f32.mrf.mxu0  ;;  %v630_v22 = vpop.f32.mrf.mxu1 }
 0x12e   :  { %v1697_v21 = vor.u32 %v1901_v19, %v1696_v18  ;;  %v1698_v22 = vld [vmem:[#allocation10 + $0x38] sm:$0xf0]  ;;  %1205 = vmatpush.bf16.msra.mxu3 %v1781_v17 }
 0x12f   :  { %v1701_v23 = vor.u32 %v1900_v20, %v1698_v22  ;;  %1180 = vmatpush.bf16.msra.mxu1 %v1769_v27  ;;  %v118_v27 = vld [vmem:[#allocation11 + $0x8] sm:$0x3] }
 0x130   :  { %1168 = vmatpush.bf16.msra.mxu0 %v1697_v21  ;;  %v1000_v29 = vperm.slane %v118_v27, 0 }
 0x131   :  { %1194 = vmatpush.bf16.msra.mxu2 %v1701_v23 }
 0x133   :  { %v641_v35 = vpop.f32.mrf.mxu2  ;;  %v654_v36 = vpop.f32.mrf.mxu3 }
 0x134   :  { %v642_v37 = vadd.f32 %v641_v35, %v629_v31  ;;  %v1773_v31 = vor.u32 %v1918_v26, %v1770_v28  ;;  %v1693_v35 = vor.u32 %v1898_v33, %v1690_v34  ;;  %1169 = vmatpush.bf16.msra.mxu0 %v1689_v32 }
 0x135   :  { %v667_v39 = vpop.f32.mrf.mxu0  ;;  %v680_v40 = vpop.f32.mrf.mxu1 }
 0x136   :  { %v655_v38 = vadd.f32 %v654_v36, %v642_v37  ;;  %v668_v46 = vadd.f32 %v667_v39, %v283_v43  ;;  %1206 = vmatpush.bf16.msra.mxu3 %v1773_v31  ;;  %v1760_v36 = vld [vmem:[#allocation10 + $0xb0] sm:$0xf]  ;;  %v1917_v37 = vld [vmem:[#allocation10 + $0xb4] sm:$0xf0]  ;;  %1195 = vmatpush.bf16.msra.mxu2 %v1693_v35  ;;  %v1001_v35 = vperm.slane %v118_v27, 1 }
 0x137   :  { %v1761_v39 = vor.u32 %v1917_v37, %v1760_v36  ;;  %v1897_v43 = vld [vmem:[#allocation10 + $0x14] sm:$0xf0] }
 0x138   :  { %v710_v41 = vmax.f32 %v655_v38, 0.0  ;;  %v681_v49 = vadd.f32 %v680_v40, %v668_v46  ;;  %v1916_v38 = vld [vmem:[#allocation10 + $0xb4] sm:$0xf]  ;;  %v1762_v40 = vld [vmem:[#allocation10 + $0xb8] sm:$0xf0] }
 0x139   :  { %1181 = vmatpush.bf16.msra.mxu1 %v1761_v39  ;;  %v1682_v46 = vld [vmem:[#allocation10 + $0x18] sm:$0xf0] }
 0x13a   :  { %v712_v42 = vpack.c.bf16 %v710_v41, %v710_v41  ;;  %v1765_v41 = vor.u32 %v1916_v38, %v1762_v40 }
 0x13b   :  { %v643_v44 = vpop.f32.mrf.mxu2  ;;  %v656_v45 = vpop.f32.mrf.mxu3 }
 0x13c   :  { %919 = vmatmul.bf16.vlgmr.msrb.gmra.mxu0 %v712_v42  ;;  %945 = vmatmul.bf16.vlgmr.msrb.gmra.mxu2 %v712_v42  ;;  %v1680_v42 = vld [vmem:[#allocation10 + $0x10] sm:$0xf]  ;;  %v1896_v44 = vld [vmem:[#allocation10 + $0x14] sm:$0xf] }
 0x13d   :  { %v669_v47 = vpop.f32.mrf.mxu0  ;;  %v682_v48 = vpop.f32.mrf.mxu1  ;;  %v1681_v45 = vor.u32 %v1897_v43, %v1680_v42  ;;  %1207 = vmatpush.bf16.msra.mxu3 %v1765_v41 }
 0x13e   :  { %v1685_v47 = vor.u32 %v1896_v44, %v1682_v46  ;;  %v1752_v48 = vld [vmem:[#allocation10 + $0xa0] sm:$0xf] }
 0x13f   :  { %1170 = vmatpush.bf16.msra.mxu0 %v1681_v45 }
 0x140   :  { %1196 = vmatpush.bf16.msra.mxu2 %v1685_v47 }
 0x143   :  { %v693_v50 = vpop.f32.mrf.mxu2  ;;  %v706_v51 = vpop.f32.mrf.mxu3 }
 0x144   :  { %v694_v52 = vadd.f32 %v693_v50, %v681_v49  ;;  %v1915_v49 = vld [vmem:[#allocation10 + $0xa4] sm:$0xf0]  ;;  %v1914_v50 = vld [vmem:[#allocation10 + $0xa4] sm:$0xf] }
 0x146   :  { %v707_v53 = vadd.f32 %v706_v51, %v694_v52  ;;  %v1753_v51 = vor.u32 %v1915_v49, %v1752_v48  ;;  %v1754_v52 = vld [vmem:[#allocation10 + $0xa8] sm:$0xf0] }
 0x148   :  { %v711_v54 = vmax.f32 %v707_v53, 0.0  ;;  %v1757_v53 = vor.u32 %v1914_v50, %v1754_v52  ;;  %1182 = vmatpush.bf16.msra.mxu1 %v1753_v51 }
 0x14a   :  { %v713_v55 = vpack.c.bf16 %v711_v54, %v711_v54  ;;  %v1672_v54 = vld [vmem:[#allocation10] sm:$0xf]  ;;  %1208 = vmatpush.bf16.msra.mxu3 %v1757_v53 }
 0x14b   :  { %v695_v56 = vpop.f32.mrf.mxu2  ;;  %v708_v57 = vpop.f32.mrf.mxu3 }
 0x14c   :  { %932 = vmatmul.bf16.vlgmr.msrb.gmra.mxu1 %v713_v55  ;;  %958 = vmatmul.bf16.vlgmr.msrb.gmra.mxu3 %v713_v55  ;;  %v1895_v55 = vld [vmem:[#allocation10 + $0x4] sm:$0xf0]  ;;  %v1894_v56 = vld [vmem:[#allocation10 + $0x4] sm:$0xf] }
 0x14d   :  { %v1673_v57 = vor.u32 %v1895_v55, %v1672_v54  ;;  %v1677_v59 = vor.u32 %v1894_v56, %v1674_v58  ;;  %1183 = vmatpush.bf16.msra.mxu1 %v1745_v63 }
 0x14e   :  { %1209 = vmatpush.bf16.msra.mxu3 %v1749_v1 }
 0x14f   :  { %1171 = vmatpush.bf16.msra.mxu0 %v1673_v57  ;;  %1197 = vmatpush.bf16.msra.mxu2 %v1677_v59 }
 0x151   :  { %1184 = vmatpush.bf16.msra.mxu1 %v1737_v5 }
 0x152   :  { %1210 = vmatpush.bf16.msra.mxu3 %v1741_v7 }
 0x1b9   :  { %v920_v8 = vpop.f32.mrf.mxu0 }
 0x1ba   :  { %v921_v14 = vadd.f32 %v920_v8, %v747_v12 }
 0x1bf   :  { %v946_v9 = vpop.f32.mrf.mxu2 }
 0x1c0   :  { %v947_v19 = vadd.f32 %v946_v9, %v748_v16 }
 0x1c1   :  { %v922_v11 = vpop.f32.mrf.mxu0 }
 0x1c7   :  { %v948_v13 = vpop.f32.mrf.mxu2 }
 0x1c9   :  { %v933_v15 = vpop.f32.mrf.mxu1 }
 0x1ca   :  { %v934_v17 = vadd.f32 %v933_v15, %v921_v14 }
 0x1cc   :  { %v963_v18 = vmax.f32 %v934_v17, 0.0 }
 0x1ce   :  { %v965_v20 = vpack.c.bf16 %v963_v18, %v963_v18 }
 0x1cf   :  { %v959_v21 = vpop.f32.mrf.mxu3 }
 0x1d0   :  { %v960_v22 = vadd.f32 %v959_v21, %v947_v19  ;;  %1172 = vmatmul.bf16.vlgmr.msra.gmra.mxu0 %v965_v20  ;;  %1198 = vmatmul.bf16.vlgmr.msra.gmra.mxu2 %v965_v20 }
 0x1d1   :  { %v935_v23 = vpop.f32.mrf.mxu1 }
 0x1d2   :  { %v964_v24 = vmax.f32 %v960_v22, 0.0 }
 0x1d4   :  { %v966_v25 = vpack.c.bf16 %v964_v24, %v964_v24 }
 0x1d6   :  { %1185 = vmatmul.bf16.vlgmr.msra.gmra.mxu1 %v966_v25  ;;  %1211 = vmatmul.bf16.vlgmr.msra.gmra.mxu3 %v966_v25 }
 0x1d7   :  { %v961_v26 = vpop.f32.mrf.mxu3 }
 0x24d   :  { %v1173_v28 = vpop.f32.mrf.mxu0 }
 0x24e   :  { %v1174_v30 = vadd.f32 %v1173_v28, %v1000_v29 }
 0x253   :  { %v1186_v31 = vpop.f32.mrf.mxu1  ;;  %v1199_v32 = vpop.f32.mrf.mxu2 }
 0x254   :  { %v1187_v33 = vadd.f32 %v1186_v31, %v1174_v30  ;;  %v1200_v37 = vadd.f32 %v1199_v32, %v1001_v35 }
 0x255   :  { %v1175_v34 = vpop.f32.mrf.mxu0 }
 0x256   :  { %1216 = vmax.xlane.f32.xlu0 %v1187_v33 }
 0x259   :  { %v1212_v36 = vpop.f32.mrf.mxu3 }
 0x25a   :  { %v1213_v40 = vadd.f32 %v1212_v36, %v1200_v37 }
 0x25b   :  { %v1188_v38 = vpop.f32.mrf.mxu1  ;;  %v1201_v39 = vpop.f32.mrf.mxu2 }
 0x25e   :  { %1239 = vmax.xlane.f32.xlu0 %v1213_v40 }
 0x261   :  { %v1214_v41 = vpop.f32.mrf.mxu3 }
 0x2c9   :  { %v1217_v42 = vpop.xlane.xlu0 %1216 }
 0x2ca   :  { %v1218_v43 = vsub.f32 %v1187_v33, %v1217_v42 }
 0x2cc   :  { %v1219_v44 = vmul.f32 1.442695, %v1218_v43 }
 0x2ce   :  { %1935 = vpow2.f32 %v1219_v44 }
 0x2d1   :  { %v1240_v45 = vpop.xlane.xlu0 %1239 }
 0x2d2   :  { %v1241_v46 = vsub.f32 %v1213_v40, %v1240_v45 }
 0x2d4   :  { %v1936_v47 = vpop.eup %1935  ;;  %v1242_v48 = vmul.f32 1.442695, %v1241_v46 }
 0x2d5   :  { %1221 = vadd.xlane.f32.xlu1 %v1936_v47 }
 0x2d6   :  { %1937 = vpow2.f32 %v1242_v48 }
 0x2dc   :  { %v1938_v49 = vpop.eup %1937 }
 0x2dd   :  { %1244 = vadd.xlane.f32.xlu1 %v1938_v49 }
 0x348   :  { %v1222_v50 = vpop.xlane.xlu1 %1221 }
 0x349   :  { %1939 = vrcp.f32 %v1222_v50  ;;  %v1234_v55 = vand.u32 2147483648, %v1222_v50  ;;  %v1232_v57 = vand.u32 2147483647, %v1222_v50  ;;  %vm1228_vm3 = vweird.f32 %v1222_v50 }
 0x34b   :  { %v1235_v60 = vor.u32 1.1754944e-38, %v1234_v55  ;;  %vm1233_vm5 = vcmp.eq.f32.partialorder %v1232_v57, 8.507059e+37 }
 0x34f   :  { %v1940_v51 = vpop.eup %1939 }
 0x350   :  { %v1224_v52 = vmul.f32 %v1940_v51, %v1222_v50  ;;  %v1245_v53 = vpop.xlane.xlu1 %1244  ;;  %vm1229_vm2 = vweird.f32 %v1940_v51 }
 0x351   :  { %1941 = vrcp.f32 %v1245_v53  ;;  %vm1230_vm4 = vmor %vm1228_vm3, %vm1229_vm2  ;;  %v1257_v2 = vand.u32 2147483648, %v1245_v53  ;;  %v1255_v4 = vand.u32 2147483647, %v1245_v53  ;;  %vm1251_vm7 = vweird.f32 %v1245_v53 }
 0x352   :  { %v1225_v54 = vsub.f32 1.0, %v1224_v52 }
 0x353   :  { %v1258_v6 = vor.u32 1.1754944e-38, %v1257_v2  ;;  %vm1256_vm9 = vcmp.eq.f32.partialorder %v1255_v4, 8.507059e+37 }
 0x354   :  { %v1226_v56 = vmul.f32 %v1940_v51, %v1225_v54 }
 0x356   :  { %v1227_v58 = vadd.f32 %v1940_v51, %v1226_v56 }
 0x357   :  { %v1942_v59 = vpop.eup %1941 }
 0x358   :  { %v1247_v61 = vmul.f32 %v1942_v59, %v1245_v53  ;;  %v1231_v62 = vsel %vm1230_vm4, %v1940_v51, %v1227_v58  ;;  %vm1252_vm6 = vweird.f32 %v1942_v59 }
 0x359   :  { %v1236_v63 = vsel %vm1233_vm5, %v1235_v60, %v1231_v62  ;;  %vm1253_vm8 = vmor %vm1251_vm7, %vm1252_vm6 }
 0x35a   :  { %v1248_v0 = vsub.f32 1.0, %v1247_v61  ;;  %v1237_v1 = vmul.f32 %v1936_v47, %v1236_v63 }
 0x35c   :  { %v1249_v3 = vmul.f32 %v1942_v59, %v1248_v0  ;;  %1238 = vst [vmem:[#allocation13] sm:$0xff] %v1237_v1 }
 0x35e   :  { %v1250_v5 = vadd.f32 %v1942_v59, %v1249_v3 }
 0x360   :  { %v1254_v7 = vsel %vm1253_vm8, %v1942_v59, %v1250_v5 }
 0x361   :  { %v1259_v8 = vsel %vm1256_vm9, %v1258_v6, %v1254_v7 }
 0x362   :  { %v1260_v9 = vmul.f32 %v1938_v49, %v1259_v8 }
 0x364   :  { %1261 = vst [vmem:[#allocation13 + $0x8] sm:$0xff] %v1260_v9 }
 0x365   :  { %1272 = dma.vmem_to_hbm [thread:$0]  %s1268_s5, 256, %s1270_s27, [#allocation4]  }
 0x366   :  { %2119 = dma.done.wait [#allocation4], 256  }
 0x367   :  { %2120 = vsyncadd [#allocation4], 4294967040 }
 0x368   :  { %1277 = vsyncpa [#allocation3], 1 }
 0x369   :  { %1278 = vsyncpa [#allocation6], 1 }
 0x36a   :  { %1279 = vsyncpa [#allocation9], 1 }
 0x36b   :  { %1280 = vsyncpa [#allocation12], 1 }
 0x36c   :  { %1281 = vsyncpa [#allocation4], 1 }

</bundles_post_ra>
